<compile_context>
chip_gen: v7x
topology: tpu7x:2x2x1
jax: 0.10.0
libtpu: 0.0.40
codegen_flags: <defaults>
</compile_context>

<pallas_src>
import jax
import jax.numpy as jnp
from jax import lax
from jax.experimental import pallas as pl
from jax.experimental.pallas import tpu as pltpu

# ---------------------------------------------------------------------------
# Synthetic classifier config (nn.Embedding(V,E), bi-LSTM(E,H), Linear(2H,1)).
# ---------------------------------------------------------------------------
VOCAB = 50
EMBED = 32      # embedding dim E
HIDDEN = 32     # model.dimension (per-direction hidden) -> 4H = 128 lanes
BATCH = 2
SEQ = 8

XI = 0.01
EPS = 0.1
IP = 2


# ---------------------------------------------------------------------------
# Forward kernel: fused packed bidirectional LSTM + Linear + sigmoid,
# emitting residuals (gate activations, carried cell states) for the backward.
# Row layout everywhere: rows 0:B = forward direction, rows B:2B = reverse
# (time-reversed) direction, stacked per step -> (S*2B, ...) 2-D slabs.
# ---------------------------------------------------------------------------
def _bilstm_fwd_kernel(xw_ref, b_ref, mask_ref, wih_ref, whh_ref,
                       fcwf_ref, fcwr_ref, fcb_ref,
                       prob_ref, acts_ref, cs_ref, gscr):
    B = prob_ref.shape[0]
    B2 = 2 * B
    H = whh_ref.shape[0]
    FH = 4 * H
    SB2 = acts_ref.shape[0]
    S = SB2 // B2

    # ---- hoisted input projection (bf16 MXU feed) with the bias folded in,
    # staged in a VMEM scratch so per-step reads are plain vlds off the chain.
    gscr[...] = jnp.dot(xw_ref[...].astype(jnp.bfloat16),
                        wih_ref[...].astype(jnp.bfloat16),
                        preferred_element_type=jnp.float32) + b_ref[...]

    whh = whh_ref[...].astype(jnp.bfloat16)          # (H, 8H), cast once

    # Static masks, broadcast ONCE outside the unrolled loop.
    is_fwd = jnp.broadcast_to(
        lax.broadcasted_iota(jnp.int32, (B2, 1), 0) < B, (B2, FH))
    lane = lax.broadcasted_iota(jnp.int32, (B2, FH), 1)
    is_g = (lane >= 2 * H) & (lane < 3 * H)

    # Packed-sequence masks -> bool, pre-broadcast, all hoisted off the chain.
    m_all = mask_ref[...] != 0.0                                     # (S*2B,1)
    m_list = [jnp.broadcast_to(m_all[t * B2:(t + 1) * B2, :], (B2, H))
              for t in range(S)]

    h = jnp.zeros((B2, H), jnp.float32)
    c = jnp.zeros((B2, H), jnp.float32)
    acts = []
    cs = []

    # Fully unrolled recurrence: ONE bf16 MXU matmul + ONE EUP push per step.
    for t in range(S):
        rec = jnp.dot(h.astype(jnp.bfloat16), whh,
                      preferred_element_type=jnp.float32)            # (2B, 8H)
        rec = jnp.where(is_fwd, rec[:, :FH], rec[:, FH:])            # diag pick
        gates = gscr[pl.ds(t * B2, B2), :] + rec                     # bias folded

        # i/f/o weight columns were pre-scaled by 0.5 host-side, so a single
        # tanh gives tanh(z) on g lanes and tanh(z/2) on i/f/o lanes.
        th = jnp.tanh(gates)
        sg = 0.5 * (th + 1.0)                    # sigmoid(z) on i/f/o lanes
        acts.append(jnp.where(is_g, th, sg))     # residuals for the backward

        i = sg[:, 0 * H:1 * H]
        f = sg[:, 1 * H:2 * H]
        g = th[:, 2 * H:3 * H]
        o = sg[:, 3 * H:4 * H]

        m = m_list[t]
        c = jnp.where(m, f * c + i * g, c)       # packed-seq mask: pure select
        h = jnp.where(m, o * jnp.tanh(c), h)
        cs.append(c)

    # Dense residual stores: one (S*2B, 4H) full-tile write + one (S*2B, H).
    acts_ref[...] = jnp.concatenate(acts, axis=0)
    cs_ref[...] = jnp.concatenate(cs, axis=0)

    # FC head + sigmoid: VPU multiply + lane reduce (no N=1 MXU matmul).
    h_f = h[:B, :]      # == output[b, len-1, :H]   (forward final state)
    h_r = h[B:, :]      # == output[:, 0, H:]       (reverse final state)
    logit = jnp.sum(h_f * fcwf_ref[...] + h_r * fcwr_ref[...],
                    axis=-1, keepdims=True) + fcb_ref[...]
    prob_ref[...] = 0.5 * (jnp.tanh(0.5 * logit) + 1.0)              # sigmoid


# ---------------------------------------------------------------------------
# Backward kernel: analytic BPTT from the forward residuals (no forward
# recompute).  Emits d(x_embed) rows in the same (S*2B, E) layout.
# ---------------------------------------------------------------------------
def _bilstm_bwd_kernel(gcot_ref, prob_ref, acts_ref, cs_ref, mask_ref,
                       wihT_ref, whhT_ref, fcwf_ref, fcwr_ref, dx_ref):
    B = prob_ref.shape[0]
    B2 = 2 * B
    H = whhT_ref.shape[1] // 2
    E = wihT_ref.shape[1] // 2
    SB2 = acts_ref.shape[0]
    S = SB2 // B2

    # Head: prob = sigmoid(logit), logit = [h_f|h_r] @ fc_w + fc_b.
    p = prob_ref[...]
    dlogit = gcot_ref[...] * p * (1.0 - p)                            # (B, 1)
    dh = jnp.concatenate([dlogit * fcwf_ref[...],
                          dlogit * fcwr_ref[...]], axis=0)            # (2B, H)
    dc = jnp.zeros_like(dh)

    is_fwd_h = jnp.broadcast_to(
        lax.broadcasted_iota(jnp.int32, (B2, 1), 0) < B, (B2, H))
    is_fwd_e = jnp.broadcast_to(
        lax.broadcasted_iota(jnp.int32, (B2, 1), 0) < B, (B2, E))

    m_all = mask_ref[...] != 0.0
    m_list = [jnp.broadcast_to(m_all[t * B2:(t + 1) * B2, :], (B2, H))
              for t in range(S)]

    # Off-chain precompute: tanh(c_t) for every step in one EUP push.
    tc_all = jnp.tanh(cs_ref[...])                                    # (S*2B,H)

    wihT = wihT_ref[...]        # (4H, 2E)  backward dots kept f32 for accuracy
    whhT = whhT_ref[...]        # (4H, 2H)

    zeros_c = jnp.zeros((B2, H), jnp.float32)
    dx_list = [None] * S

    for t in range(S - 1, -1, -1):
        act = acts_ref[pl.ds(t * B2, B2), :]                          # (2B, 4H)
        i = act[:, 0 * H:1 * H]
        f = act[:, 1 * H:2 * H]
        gg = act[:, 2 * H:3 * H]
        o = act[:, 3 * H:4 * H]
        c_tm1 = cs_ref[pl.ds((t - 1) * B2, B2), :] if t > 0 else zeros_c
        tc = tc_all[t * B2:(t + 1) * B2, :]
        m = m_list[t]

        dhh = jnp.where(m, dh, 0.0)              # padded steps -> zero grad
        dcc = jnp.where(m, dc, 0.0) + dhh * o * (1.0 - tc * tc)
        do_ = dhh * tc
        dz = jnp.concatenate(
            [dcc * gg * i * (1.0 - i),           # d pre-act i
             dcc * c_tm1 * f * (1.0 - f),        # d pre-act f
             dcc * i * (1.0 - gg * gg),          # d pre-act g
             do_ * o * (1.0 - o)], axis=-1)      # d pre-act o        (2B, 4H)

        dxw = jnp.dot(dz, wihT, preferred_element_type=jnp.float32)  # (2B, 2E)
        dx_list[t] = jnp.where(is_fwd_e, dxw[:, :E], dxw[:, E:])

        rec = jnp.dot(dz, whhT, preferred_element_type=jnp.float32)  # (2B, 2H)
        dh = jnp.where(is_fwd_h, rec[:, :H], rec[:, H:]) + jnp.where(m, 0.0, dh)
        dc = dcc * f + jnp.where(m, 0.0, dc)

    dx_ref[...] = jnp.concatenate(dx_list, axis=0)                    # (S*2B,E)


# ---------------------------------------------------------------------------
# Host-side packing + pallas_call wrappers.
# ---------------------------------------------------------------------------
def _prep_inputs(x_embed, x_len):
    """(B,S,E) embeddings -> block-structured kernel inputs + packed-seq masks."""
    B, S, E = x_embed.shape
    x_f = jnp.transpose(x_embed.astype(jnp.float32), (1, 0, 2))        # (S,B,E)
    x_r = x_f[::-1]                                                    # reversed
    z = jnp.zeros_like(x_f)
    # forward rows [x | 0], reverse rows [0 | x_rev]  (block-diag projection)
    xw = jnp.concatenate([jnp.concatenate([x_f, z], axis=-1),
                          jnp.concatenate([z, x_r], axis=-1)], axis=1)  # (S,2B,2E)
    xw2d = xw.reshape(S * 2 * B, 2 * E)

    t = jnp.arange(S, dtype=jnp.int32)[:, None, None]
    lens = x_len.astype(jnp.int32)[None, :, None]
    m_f = (lens > t).astype(jnp.float32)
    m_r = (lens > (S - 1 - t)).astype(jnp.float32)
    masks2d = jnp.concatenate([m_f, m_r], axis=1).reshape(S * 2 * B, 1)
    return xw2d, masks2d


def _kernel_params(params, batch, seq):
    """Weights pre-packed for the fused kernels (done once per classifier)."""
    H = params["whh_f"].shape[0]
    lane = jnp.arange(4 * H)
    # Pre-scale i/f/o columns by 0.5 so the kernel's single tanh implements
    # sigmoid(z)=0.5*(tanh(z/2)+1) with NO per-step multiply on the chain.
    gate_scale = jnp.where((lane >= 2 * H) & (lane < 3 * H), 1.0, 0.5)[None, :]
    b_rows = jnp.concatenate(
        [jnp.broadcast_to(params["b_f"] * gate_scale, (batch, 4 * H)),
         jnp.broadcast_to(params["b_r"] * gate_scale, (batch, 4 * H))], axis=0)
    return {
        "wih_blk": jnp.concatenate([params["wih_f"] * gate_scale,
                                    params["wih_r"] * gate_scale], axis=0),   # (2E,4H)
        "whh_cat": jnp.concatenate([params["whh_f"] * gate_scale,
                                    params["whh_r"] * gate_scale], axis=1),   # (H,8H)
        "b_tiled": jnp.tile(b_rows, (seq, 1)),                                # (S*2B,4H)
        "fcw_f": params["fc_w"][:H, :].T,                                     # (1,H)
        "fcw_r": params["fc_w"][H:, :].T,                                     # (1,H)
        "fcb": params["fc_b"],                                                # (1,1)
        # backward weights: original (un-scaled), transposed, lane-concat
        "wihT": jnp.concatenate([params["wih_f"].T, params["wih_r"].T], axis=1),  # (4H,2E)
        "whhT": jnp.concatenate([params["whh_f"].T, params["whh_r"].T], axis=1),  # (4H,2H)
    }


def _pallas_bilstm_fwd(xw2d, masks2d, kp, batch):
    SB2 = masks2d.shape[0]
    H = kp["whh_cat"].shape[0]
    vmem = pl.BlockSpec(memory_space=pltpu.MemorySpace.VMEM)
    # Tiny, latency-bound kernel: everything resident in VMEM, no grid.
    prob2d, acts, cs = pl.pallas_call(
        _bilstm_fwd_kernel,
        out_shape=(jax.ShapeDtypeStruct((batch, 1), jnp.float32),
                   jax.ShapeDtypeStruct((SB2, 4 * H), jnp.float32),
                   jax.ShapeDtypeStruct((SB2, H), jnp.float32)),
        in_specs=[vmem] * 8,
        out_specs=(vmem, vmem, vmem),
        scratch_shapes=[pltpu.VMEM((SB2, 4 * H), jnp.float32)],
    )(xw2d, kp["b_tiled"], masks2d, kp["wih_blk"], kp["whh_cat"],
      kp["fcw_f"], kp["fcw_r"], kp["fcb"])
    return prob2d, acts, cs


def _pallas_bilstm_bwd(gcot2d, prob2d, acts, cs, masks2d, kp, batch):
    SB2, _ = acts.shape
    E = kp["wihT"].shape[1] // 2
    S = SB2 // (2 * batch)
    vmem = pl.BlockSpec(memory_space=pltpu.MemorySpace.VMEM)
    dx_rows = pl.pallas_call(
        _bilstm_bwd_kernel,
        out_shape=jax.ShapeDtypeStruct((SB2, E), jnp.float32),
        in_specs=[vmem] * 9,
        out_specs=vmem,
    )(gcot2d, prob2d, acts, cs, masks2d, kp["wihT"], kp["whhT"],
      kp["fcw_f"], kp["fcw_r"])
    # forward rows at step t act on x_embed[:, t]; reverse rows on x[:, S-1-t]
    dxr = dx_rows.reshape(S, 2 * batch, E)
    dx = (jnp.transpose(dxr[:, :batch, :], (1, 0, 2))
          + jnp.transpose(dxr[::-1, batch:, :], (1, 0, 2)))
    return dx.astype(jnp.float32)


def make_classifier(params, x_len, seq):
    """Pallas forward + Pallas analytic-BPTT backward (custom VJP)."""
    B = x_len.shape[0]
    kp = _kernel_params(params, B, seq)

    @jax.custom_vjp
    def classify(x_embed):
        xw2d, masks2d = _prep_inputs(x_embed, x_len)
        prob2d, _, _ = _pallas_bilstm_fwd(xw2d, masks2d, kp, B)
        return prob2d[:, 0]

    def classify_fwd(x_embed):
        xw2d, masks2d = _prep_inputs(x_embed, x_len)
        prob2d, acts, cs = _pallas_bilstm_fwd(xw2d, masks2d, kp, B)
        return prob2d[:, 0], (prob2d, acts, cs, masks2d)

    def classify_bwd(res, g):
        prob2d, acts, cs, masks2d = res
        gcot2d = g.astype(jnp.float32)[:, None]
        dx = _pallas_bilstm_bwd(gcot2d, prob2d, acts, cs, masks2d, kp, B)
        return (dx,)

    classify.defvjp(classify_fwd, classify_bwd)
    return classify


# ---------------------------------------------------------------------------
# Pure-JAX reference (f32, HIGHEST precision) — verification only.
# ---------------------------------------------------------------------------
def _ref_lstm_forward(x_embed, x_len, params):
    B, S, E = x_embed.shape
    H = params["whh_f"].shape[0]
    hp = lax.Precision.HIGHEST
    lens = x_len.astype(jnp.int32)[:, None]
    x_tm = jnp.transpose(x_embed.astype(jnp.float32), (1, 0, 2))

    def cell(x_t, h, c, wih, whh, b):
        gates = (jnp.dot(x_t, wih, precision=hp)
                 + jnp.dot(h, whh, precision=hp) + b)
        i = jax.nn.sigmoid(gates[:, 0 * H:1 * H])
        f = jax.nn.sigmoid(gates[:, 1 * H:2 * H])
        g = jnp.tanh(gates[:, 2 * H:3 * H])
        o = jax.nn.sigmoid(gates[:, 3 * H:4 * H])
        c_new = f * c + i * g
        return o * jnp.tanh(c_new), c_new

    def body(carry, t):
        h_f, c_f, h_r, c_r = carry
        hf2, cf2 = cell(x_tm[t], h_f, c_f,
                        params["wih_f"], params["whh_f"], params["b_f"])
        m_f = (lens > t).astype(jnp.float32)
        h_f = m_f * hf2 + (1.0 - m_f) * h_f
        c_f = m_f * cf2 + (1.0 - m_f) * c_f
        t_r = S - 1 - t
        hr2, cr2 = cell(x_tm[t_r], h_r, c_r,
                        params["wih_r"], params["whh_r"], params["b_r"])
        m_r = (lens > t_r).astype(jnp.float32)
        h_r = m_r * hr2 + (1.0 - m_r) * h_r
        c_r = m_r * cr2 + (1.0 - m_r) * c_r
        return (h_f, c_f, h_r, c_r), None

    zeros = jnp.zeros((B, H), jnp.float32)
    (h_f, _, h_r, _), _ = lax.scan(body, (zeros,) * 4, jnp.arange(S))
    feat = jnp.concatenate([h_f, h_r], axis=1)
    logit = jnp.dot(feat, params["fc_w"], precision=hp) + params["fc_b"]
    return jax.nn.sigmoid(logit)[:, 0]


# ---------------------------------------------------------------------------
# VAT helpers (standard implementations of the repo's external helpers).
# ---------------------------------------------------------------------------
def l2_normalize(d):
    norm = jnp.sqrt(jnp.sum(d * d, axis=tuple(range(1, d.ndim)), keepdims=True))
    return d / (norm + 1e-8)


def kl_div(pred_hat, pred):
    # Bernoulli KL(pred || pred_hat), averaged over the batch.
    e = 1e-7
    p = jnp.clip(pred, e, 1.0 - e)
    q = jnp.clip(pred_hat, e, 1.0 - e)
    return jnp.mean(p * jnp.log(p / q) + (1.0 - p) * jnp.log((1.0 - p) / (1.0 - q)))


# ---------------------------------------------------------------------------
# VAT_LSTM.forward(model, x, x_len): classifier built once (concrete packed
# weights), the whole VAT procedure — pred, `ip` power iterations (each one
# fused fwd + one fused bwd kernel) and the final KL — under a single jax.jit.
# ---------------------------------------------------------------------------
def make_vat_forward(params, x_len, seq, xi=XI, eps=EPS, ip=IP):
    classifier = make_classifier(params, x_len, seq)
    embedding = params["embedding"]

    @jax.jit
    def vat_forward(x_tokens, noise_key):
        x_embed = embedding[x_tokens]                      # model.embedding(x)
        pred = lax.stop_gradient(classifier(x_embed))      # torch.no_grad()

        d = l2_normalize(
            jax.random.normal(noise_key, x_tokens.shape, jnp.float32))

        def adv_loss(d_):
            x_perturb = x_embed + (xi * d_)[:, :, None]    # (xi*d).view(B,S,1)
            return kl_div(classifier(x_perturb), pred)

        for _ in range(ip):                                # power iterations
            d = l2_normalize(jax.grad(adv_loss)(d))

        pred_hat = classifier(x_embed + (eps * d)[:, :, None])
        return kl_div(pred_hat, pred)

    return vat_forward


# ---------------------------------------------------------------------------
# Deterministic parameter init (synthetic weights, PyTorch-like scales).
# ---------------------------------------------------------------------------
def init_params(key):
    ks = jax.random.split(key, 9)
    H, E, V = HIDDEN, EMBED, VOCAB
    s = 1.0 / float(jnp.sqrt(jnp.float32(H)))
    s_fc = 1.0 / float(jnp.sqrt(jnp.float32(2 * H)))
    u = lambda k, shp, sc: jax.random.uniform(k, shp, jnp.float32, -sc, sc)
    return {
        "embedding": jax.random.normal(ks[0], (V, E), jnp.float32) * 0.3,
        # LSTM weights stored transposed: (E,4H)/(H,4H); gate order i,f,g,o;
        # bias is the combined b_ih + b_hh.
        "wih_f": u(ks[1], (E, 4 * H), s),
        "whh_f": u(ks[2], (H, 4 * H), s),
        "b_f":   u(ks[3], (1, 4 * H), s),
        "wih_r": u(ks[4], (E, 4 * H), s),
        "whh_r": u(ks[5], (H, 4 * H), s),
        "b_r":   u(ks[6], (1, 4 * H), s),
        "fc_w":  u(ks[7], (2 * H, 1), s_fc),
        "fc_b":  u(ks[8], (1, 1), s_fc),
    }


if __name__ == "__main__":
    root = jax.random.PRNGKey(0)
    k_param, k_tok, k_noise = jax.random.split(root, 3)
    params = init_params(k_param)

    x_tokens = jax.random.randint(k_tok, (BATCH, SEQ), 0, VOCAB, dtype=jnp.int32)
    x_len = jnp.array([SEQ, SEQ - 3], dtype=jnp.int32)   # variable packed lengths

    classifier = make_classifier(params, x_len, SEQ)
    x_embed = params["embedding"][x_tokens]

    # Forward: fused Pallas kernel (bf16 MXU feed) vs f32 HIGHEST reference.
    p_pallas = jax.block_until_ready(classifier(x_embed))
    p_ref = _ref_lstm_forward(x_embed, x_len, params)
    assert float(jnp.max(jnp.abs(p_pallas - p_ref))) < 5e-3

    # Backward: fused Pallas BPTT (from kernel residuals) vs autodiff of the
    # f32 reference.  Structural bugs would be O(1); bf16 forward gives ~1%.
    g_k = jax.grad(lambda xe: jnp.sum(classifier(xe)))(x_embed)
    g_r = jax.grad(lambda xe: jnp.sum(_ref_lstm_forward(xe, x_len, params)))(x_embed)
    rel = jnp.max(jnp.abs(g_k - g_r)) / (jnp.max(jnp.abs(g_r)) + 1e-12)
    assert float(rel) < 5e-2

    vat_forward = make_vat_forward(params, x_len, SEQ)
    lds = jax.block_until_ready(vat_forward(x_tokens, k_noise))
    assert bool(jnp.isfinite(lds))
    print("KERNEL_OK")
</pallas_src>

<mosaic_0001>
module attributes {stable_mosaic.version = 11 : i64} {
  func.func @_bilstm_fwd_kernel(%arg0: memref<32x64xf32, #tpu.memory_space<vmem>>, %arg1: memref<32x128xf32, #tpu.memory_space<vmem>>, %arg2: memref<32x1xf32, #tpu.memory_space<vmem>>, %arg3: memref<64x128xf32, #tpu.memory_space<vmem>>, %arg4: memref<32x256xf32, #tpu.memory_space<vmem>>, %arg5: memref<1x32xf32, #tpu.memory_space<vmem>>, %arg6: memref<1x32xf32, #tpu.memory_space<vmem>>, %arg7: memref<1x1xf32, #tpu.memory_space<vmem>>, %arg8: memref<2x1xf32, #tpu.memory_space<vmem>>, %arg9: memref<32x128xf32, #tpu.memory_space<vmem>>, %arg10: memref<32x32xf32, #tpu.memory_space<vmem>>, %arg11: memref<32x128xf32, #tpu.memory_space<vmem>>) attributes {dimension_semantics = [], scalar_prefetch = 0 : i64, scratch_operands = 1 : i64, tpu.core_type = #tpu.core_type<tc>} {
    %c0 = arith.constant 0 : index
    %c0_0 = arith.constant 0 : index
    %0 = vector.load %arg0[%c0, %c0_0] : memref<32x64xf32, #tpu.memory_space<vmem>>, vector<32x64xf32>
    %1 = arith.truncf %0 : vector<32x64xf32> to vector<32x64xbf16>
    %c0_1 = arith.constant 0 : index
    %c0_2 = arith.constant 0 : index
    %2 = vector.load %arg3[%c0_1, %c0_2] : memref<64x128xf32, #tpu.memory_space<vmem>>, vector<64x128xf32>
    %3 = arith.truncf %2 : vector<64x128xf32> to vector<64x128xbf16>
    %cst = arith.constant dense<0.000000e+00> : vector<32x128xf32>
    %4 = tpu.matmul %1, %3, %cst {dimension_numbers = #tpu.dot_dimension_numbers<[1], [0], [0], [1], [0, 0, 1, 1], [], []>} : vector<32x64xbf16>, vector<64x128xbf16>, vector<32x128xf32> -> vector<32x128xf32>
    %c0_3 = arith.constant 0 : index
    %c0_4 = arith.constant 0 : index
    %5 = vector.load %arg1[%c0_3, %c0_4] : memref<32x128xf32, #tpu.memory_space<vmem>>, vector<32x128xf32>
    %6 = arith.addf %4, %5 : vector<32x128xf32>
    %c0_5 = arith.constant 0 : index
    %c0_6 = arith.constant 0 : index
    %7 = vector.load %arg11[%c0_5, %c0_6] : memref<32x128xf32, #tpu.memory_space<vmem>>, vector<32x128xf32>
    tpu.vector_store %arg11[%c0_5, %c0_6], %6 {strides = array<i32>} : memref<32x128xf32, #tpu.memory_space<vmem>>, vector<32x128xf32>,
    %c0_7 = arith.constant 0 : index
    %c0_8 = arith.constant 0 : index
    %8 = vector.load %arg4[%c0_7, %c0_8] : memref<32x256xf32, #tpu.memory_space<vmem>>, vector<32x256xf32>
    %9 = arith.truncf %8 : vector<32x256xf32> to vector<32x256xbf16>
    %10 = tpu.iota {dimensions = array<i32: 0>} : vector<4x1xi32>
    %c2_i32 = arith.constant 2 : i32
    %11 = vector.broadcast %c2_i32 : i32 to vector<4x1xi32>
    %12 = arith.cmpi slt, %10, %11 : vector<4x1xi32>
    %13 = vector.shape_cast %12 : vector<4x1xi1> to vector<4x1xi1>
    %14 = vector.broadcast %13 : vector<4x1xi1> to vector<4x128xi1>
    %15 = tpu.iota {dimensions = array<i32: 1>} : vector<4x128xi32>
    %c64_i32 = arith.constant 64 : i32
    %16 = vector.broadcast %c64_i32 : i32 to vector<4x128xi32>
    %17 = arith.cmpi sge, %15, %16 : vector<4x128xi32>
    %c96_i32 = arith.constant 96 : i32
    %18 = vector.broadcast %c96_i32 : i32 to vector<4x128xi32>
    %19 = arith.cmpi slt, %15, %18 : vector<4x128xi32>
    %20 = arith.andi %17, %19 : vector<4x128xi1>
    %c0_9 = arith.constant 0 : index
    %c0_10 = arith.constant 0 : index
    %21 = vector.load %arg2[%c0_9, %c0_10] : memref<32x1xf32, #tpu.memory_space<vmem>>, vector<32x1xf32>
    %cst_11 = arith.constant 0.000000e+00 : f32
    %22 = vector.broadcast %cst_11 : f32 to vector<32x1xf32>
    %23 = arith.cmpf one, %21, %22 : vector<32x1xf32>
    %24 = vector.extract_strided_slice %23 {offsets = [0, 0], sizes = [4, 1], strides = [1, 1]} : vector<32x1xi1> to vector<4x1xi1>
    %25 = vector.shape_cast %24 : vector<4x1xi1> to vector<4x1xi1>
    %26 = vector.broadcast %25 : vector<4x1xi1> to vector<4x32xi1>
    %27 = vector.extract_strided_slice %23 {offsets = [4, 0], sizes = [4, 1], strides = [1, 1]} : vector<32x1xi1> to vector<4x1xi1>
    %28 = vector.shape_cast %27 : vector<4x1xi1> to vector<4x1xi1>
    %29 = vector.broadcast %28 : vector<4x1xi1> to vector<4x32xi1>
    %30 = vector.extract_strided_slice %23 {offsets = [8, 0], sizes = [4, 1], strides = [1, 1]} : vector<32x1xi1> to vector<4x1xi1>
    %31 = vector.shape_cast %30 : vector<4x1xi1> to vector<4x1xi1>
    %32 = vector.broadcast %31 : vector<4x1xi1> to vector<4x32xi1>
    %33 = vector.extract_strided_slice %23 {offsets = [12, 0], sizes = [4, 1], strides = [1, 1]} : vector<32x1xi1> to vector<4x1xi1>
    %34 = vector.shape_cast %33 : vector<4x1xi1> to vector<4x1xi1>
    %35 = vector.broadcast %34 : vector<4x1xi1> to vector<4x32xi1>
    %36 = vector.extract_strided_slice %23 {offsets = [16, 0], sizes = [4, 1], strides = [1, 1]} : vector<32x1xi1> to vector<4x1xi1>
    %37 = vector.shape_cast %36 : vector<4x1xi1> to vector<4x1xi1>
    %38 = vector.broadcast %37 : vector<4x1xi1> to vector<4x32xi1>
    %39 = vector.extract_strided_slice %23 {offsets = [20, 0], sizes = [4, 1], strides = [1, 1]} : vector<32x1xi1> to vector<4x1xi1>
    %40 = vector.shape_cast %39 : vector<4x1xi1> to vector<4x1xi1>
    %41 = vector.broadcast %40 : vector<4x1xi1> to vector<4x32xi1>
    %42 = vector.extract_strided_slice %23 {offsets = [24, 0], sizes = [4, 1], strides = [1, 1]} : vector<32x1xi1> to vector<4x1xi1>
    %43 = vector.shape_cast %42 : vector<4x1xi1> to vector<4x1xi1>
    %44 = vector.broadcast %43 : vector<4x1xi1> to vector<4x32xi1>
    %45 = vector.extract_strided_slice %23 {offsets = [28, 0], sizes = [4, 1], strides = [1, 1]} : vector<32x1xi1> to vector<4x1xi1>
    %46 = vector.shape_cast %45 : vector<4x1xi1> to vector<4x1xi1>
    %47 = vector.broadcast %46 : vector<4x1xi1> to vector<4x32xi1>
    %cst_12 = arith.constant 0.000000e+00 : f32
    %48 = vector.broadcast %cst_12 : f32 to vector<4x32xf32>
    %cst_13 = arith.constant 0.000000e+00 : f32
    %49 = vector.broadcast %cst_13 : f32 to vector<4x32xf32>
    %50 = arith.truncf %48 : vector<4x32xf32> to vector<4x32xbf16>
    %cst_14 = arith.constant dense<0.000000e+00> : vector<4x256xf32>
    %51 = tpu.matmul %50, %9, %cst_14 {dimension_numbers = #tpu.dot_dimension_numbers<[1], [0], [0], [1], [0, 0, 1, 1], [], []>} : vector<4x32xbf16>, vector<32x256xbf16>, vector<4x256xf32> -> vector<4x256xf32>
    %52 = vector.extract_strided_slice %51 {offsets = [0, 0], sizes = [4, 128], strides = [1, 1]} : vector<4x256xf32> to vector<4x128xf32>
    %53 = vector.extract_strided_slice %51 {offsets = [0, 128], sizes = [4, 128], strides = [1, 1]} : vector<4x256xf32> to vector<4x128xf32>
    %54 = arith.select %14, %52, %53 : vector<4x128xi1>, vector<4x128xf32>
    %c0_15 = arith.constant 0 : index
    %c0_16 = arith.constant 0 : index
    %55 = vector.load %arg11[%c0_15, %c0_16] : memref<32x128xf32, #tpu.memory_space<vmem>>, vector<4x128xf32>
    %56 = arith.addf %55, %54 : vector<4x128xf32>
    %57 = math.tanh %56 : vector<4x128xf32>
    %cst_17 = arith.constant 1.000000e+00 : f32
    %58 = vector.broadcast %cst_17 : f32 to vector<4x128xf32>
    %59 = arith.addf %57, %58 : vector<4x128xf32>
    %cst_18 = arith.constant 5.000000e-01 : f32
    %60 = vector.broadcast %cst_18 : f32 to vector<4x128xf32>
    %61 = arith.mulf %60, %59 : vector<4x128xf32>
    %62 = arith.select %20, %57, %61 : vector<4x128xi1>, vector<4x128xf32>
    %63 = vector.extract_strided_slice %61 {offsets = [0, 0], sizes = [4, 32], strides = [1, 1]} : vector<4x128xf32> to vector<4x32xf32>
    %64 = vector.extract_strided_slice %61 {offsets = [0, 32], sizes = [4, 32], strides = [1, 1]} : vector<4x128xf32> to vector<4x32xf32>
    %65 = vector.extract_strided_slice %57 {offsets = [0, 64], sizes = [4, 32], strides = [1, 1]} : vector<4x128xf32> to vector<4x32xf32>
    %66 = vector.extract_strided_slice %61 {offsets = [0, 96], sizes = [4, 32], strides = [1, 1]} : vector<4x128xf32> to vector<4x32xf32>
    %67 = arith.mulf %64, %49 : vector<4x32xf32>
    %68 = arith.mulf %63, %65 : vector<4x32xf32>
    %69 = arith.addf %67, %68 : vector<4x32xf32>
    %70 = arith.select %26, %69, %49 : vector<4x32xi1>, vector<4x32xf32>
    %71 = math.tanh %70 : vector<4x32xf32>
    %72 = arith.mulf %66, %71 : vector<4x32xf32>
    %73 = arith.select %26, %72, %48 : vector<4x32xi1>, vector<4x32xf32>
    %74 = arith.truncf %73 : vector<4x32xf32> to vector<4x32xbf16>
    %cst_19 = arith.constant dense<0.000000e+00> : vector<4x256xf32>
    %75 = tpu.matmul %74, %9, %cst_19 {dimension_numbers = #tpu.dot_dimension_numbers<[1], [0], [0], [1], [0, 0, 1, 1], [], []>} : vector<4x32xbf16>, vector<32x256xbf16>, vector<4x256xf32> -> vector<4x256xf32>
    %76 = vector.extract_strided_slice %75 {offsets = [0, 0], sizes = [4, 128], strides = [1, 1]} : vector<4x256xf32> to vector<4x128xf32>
    %77 = vector.extract_strided_slice %75 {offsets = [0, 128], sizes = [4, 128], strides = [1, 1]} : vector<4x256xf32> to vector<4x128xf32>
    %78 = arith.select %14, %76, %77 : vector<4x128xi1>, vector<4x128xf32>
    %c4 = arith.constant 4 : index
    %c0_20 = arith.constant 0 : index
    %79 = vector.load %arg11[%c4, %c0_20] : memref<32x128xf32, #tpu.memory_space<vmem>>, vector<4x128xf32>
    %80 = arith.addf %79, %78 : vector<4x128xf32>
    %81 = math.tanh %80 : vector<4x128xf32>
    %cst_21 = arith.constant 1.000000e+00 : f32
    %82 = vector.broadcast %cst_21 : f32 to vector<4x128xf32>
    %83 = arith.addf %81, %82 : vector<4x128xf32>
    %cst_22 = arith.constant 5.000000e-01 : f32
    %84 = vector.broadcast %cst_22 : f32 to vector<4x128xf32>
    %85 = arith.mulf %84, %83 : vector<4x128xf32>
    %86 = arith.select %20, %81, %85 : vector<4x128xi1>, vector<4x128xf32>
    %87 = vector.extract_strided_slice %85 {offsets = [0, 0], sizes = [4, 32], strides = [1, 1]} : vector<4x128xf32> to vector<4x32xf32>
    %88 = vector.extract_strided_slice %85 {offsets = [0, 32], sizes = [4, 32], strides = [1, 1]} : vector<4x128xf32> to vector<4x32xf32>
    %89 = vector.extract_strided_slice %81 {offsets = [0, 64], sizes = [4, 32], strides = [1, 1]} : vector<4x128xf32> to vector<4x32xf32>
    %90 = vector.extract_strided_slice %85 {offsets = [0, 96], sizes = [4, 32], strides = [1, 1]} : vector<4x128xf32> to vector<4x32xf32>
    %91 = arith.mulf %88, %70 : vector<4x32xf32>
    %92 = arith.mulf %87, %89 : vector<4x32xf32>
    %93 = arith.addf %91, %92 : vector<4x32xf32>
    %94 = arith.select %29, %93, %70 : vector<4x32xi1>, vector<4x32xf32>
    %95 = math.tanh %94 : vector<4x32xf32>
    %96 = arith.mulf %90, %95 : vector<4x32xf32>
    %97 = arith.select %29, %96, %73 : vector<4x32xi1>, vector<4x32xf32>
    %98 = arith.truncf %97 : vector<4x32xf32> to vector<4x32xbf16>
    %cst_23 = arith.constant dense<0.000000e+00> : vector<4x256xf32>
    %99 = tpu.matmul %98, %9, %cst_23 {dimension_numbers = #tpu.dot_dimension_numbers<[1], [0], [0], [1], [0, 0, 1, 1], [], []>} : vector<4x32xbf16>, vector<32x256xbf16>, vector<4x256xf32> -> vector<4x256xf32>
    %100 = vector.extract_strided_slice %99 {offsets = [0, 0], sizes = [4, 128], strides = [1, 1]} : vector<4x256xf32> to vector<4x128xf32>
    %101 = vector.extract_strided_slice %99 {offsets = [0, 128], sizes = [4, 128], strides = [1, 1]} : vector<4x256xf32> to vector<4x128xf32>
    %102 = arith.select %14, %100, %101 : vector<4x128xi1>, vector<4x128xf32>
    %c8 = arith.constant 8 : index
    %c0_24 = arith.constant 0 : index
    %103 = vector.load %arg11[%c8, %c0_24] : memref<32x128xf32, #tpu.memory_space<vmem>>, vector<4x128xf32>
    %104 = arith.addf %103, %102 : vector<4x128xf32>
    %105 = math.tanh %104 : vector<4x128xf32>
    %cst_25 = arith.constant 1.000000e+00 : f32
    %106 = vector.broadcast %cst_25 : f32 to vector<4x128xf32>
    %107 = arith.addf %105, %106 : vector<4x128xf32>
    %cst_26 = arith.constant 5.000000e-01 : f32
    %108 = vector.broadcast %cst_26 : f32 to vector<4x128xf32>
    %109 = arith.mulf %108, %107 : vector<4x128xf32>
    %110 = arith.select %20, %105, %109 : vector<4x128xi1>, vector<4x128xf32>
    %111 = vector.extract_strided_slice %109 {offsets = [0, 0], sizes = [4, 32], strides = [1, 1]} : vector<4x128xf32> to vector<4x32xf32>
    %112 = vector.extract_strided_slice %109 {offsets = [0, 32], sizes = [4, 32], strides = [1, 1]} : vector<4x128xf32> to vector<4x32xf32>
    %113 = vector.extract_strided_slice %105 {offsets = [0, 64], sizes = [4, 32], strides = [1, 1]} : vector<4x128xf32> to vector<4x32xf32>
    %114 = vector.extract_strided_slice %109 {offsets = [0, 96], sizes = [4, 32], strides = [1, 1]} : vector<4x128xf32> to vector<4x32xf32>
    %115 = arith.mulf %112, %94 : vector<4x32xf32>
    %116 = arith.mulf %111, %113 : vector<4x32xf32>
    %117 = arith.addf %115, %116 : vector<4x32xf32>
    %118 = arith.select %32, %117, %94 : vector<4x32xi1>, vector<4x32xf32>
    %119 = math.tanh %118 : vector<4x32xf32>
    %120 = arith.mulf %114, %119 : vector<4x32xf32>
    %121 = arith.select %32, %120, %97 : vector<4x32xi1>, vector<4x32xf32>
    %122 = arith.truncf %121 : vector<4x32xf32> to vector<4x32xbf16>
    %cst_27 = arith.constant dense<0.000000e+00> : vector<4x256xf32>
    %123 = tpu.matmul %122, %9, %cst_27 {dimension_numbers = #tpu.dot_dimension_numbers<[1], [0], [0], [1], [0, 0, 1, 1], [], []>} : vector<4x32xbf16>, vector<32x256xbf16>, vector<4x256xf32> -> vector<4x256xf32>
    %124 = vector.extract_strided_slice %123 {offsets = [0, 0], sizes = [4, 128], strides = [1, 1]} : vector<4x256xf32> to vector<4x128xf32>
    %125 = vector.extract_strided_slice %123 {offsets = [0, 128], sizes = [4, 128], strides = [1, 1]} : vector<4x256xf32> to vector<4x128xf32>
    %126 = arith.select %14, %124, %125 : vector<4x128xi1>, vector<4x128xf32>
    %c12 = arith.constant 12 : index
    %c0_28 = arith.constant 0 : index
    %127 = vector.load %arg11[%c12, %c0_28] : memref<32x128xf32, #tpu.memory_space<vmem>>, vector<4x128xf32>
    %128 = arith.addf %127, %126 : vector<4x128xf32>
    %129 = math.tanh %128 : vector<4x128xf32>
    %cst_29 = arith.constant 1.000000e+00 : f32
    %130 = vector.broadcast %cst_29 : f32 to vector<4x128xf32>
    %131 = arith.addf %129, %130 : vector<4x128xf32>
    %cst_30 = arith.constant 5.000000e-01 : f32
    %132 = vector.broadcast %cst_30 : f32 to vector<4x128xf32>
    %133 = arith.mulf %132, %131 : vector<4x128xf32>
    %134 = arith.select %20, %129, %133 : vector<4x128xi1>, vector<4x128xf32>
    %135 = vector.extract_strided_slice %133 {offsets = [0, 0], sizes = [4, 32], strides = [1, 1]} : vector<4x128xf32> to vector<4x32xf32>
    %136 = vector.extract_strided_slice %133 {offsets = [0, 32], sizes = [4, 32], strides = [1, 1]} : vector<4x128xf32> to vector<4x32xf32>
    %137 = vector.extract_strided_slice %129 {offsets = [0, 64], sizes = [4, 32], strides = [1, 1]} : vector<4x128xf32> to vector<4x32xf32>
    %138 = vector.extract_strided_slice %133 {offsets = [0, 96], sizes = [4, 32], strides = [1, 1]} : vector<4x128xf32> to vector<4x32xf32>
    %139 = arith.mulf %136, %118 : vector<4x32xf32>
    %140 = arith.mulf %135, %137 : vector<4x32xf32>
    %141 = arith.addf %139, %140 : vector<4x32xf32>
    %142 = arith.select %35, %141, %118 : vector<4x32xi1>, vector<4x32xf32>
    %143 = math.tanh %142 : vector<4x32xf32>
    %144 = arith.mulf %138, %143 : vector<4x32xf32>
    %145 = arith.select %35, %144, %121 : vector<4x32xi1>, vector<4x32xf32>
    %146 = arith.truncf %145 : vector<4x32xf32> to vector<4x32xbf16>
    %cst_31 = arith.constant dense<0.000000e+00> : vector<4x256xf32>
    %147 = tpu.matmul %146, %9, %cst_31 {dimension_numbers = #tpu.dot_dimension_numbers<[1], [0], [0], [1], [0, 0, 1, 1], [], []>} : vector<4x32xbf16>, vector<32x256xbf16>, vector<4x256xf32> -> vector<4x256xf32>
    %148 = vector.extract_strided_slice %147 {offsets = [0, 0], sizes = [4, 128], strides = [1, 1]} : vector<4x256xf32> to vector<4x128xf32>
    %149 = vector.extract_strided_slice %147 {offsets = [0, 128], sizes = [4, 128], strides = [1, 1]} : vector<4x256xf32> to vector<4x128xf32>
    %150 = arith.select %14, %148, %149 : vector<4x128xi1>, vector<4x128xf32>
    %c16 = arith.constant 16 : index
    %c0_32 = arith.constant 0 : index
    %151 = vector.load %arg11[%c16, %c0_32] : memref<32x128xf32, #tpu.memory_space<vmem>>, vector<4x128xf32>
    %152 = arith.addf %151, %150 : vector<4x128xf32>
    %153 = math.tanh %152 : vector<4x128xf32>
    %cst_33 = arith.constant 1.000000e+00 : f32
    %154 = vector.broadcast %cst_33 : f32 to vector<4x128xf32>
    %155 = arith.addf %153, %154 : vector<4x128xf32>
    %cst_34 = arith.constant 5.000000e-01 : f32
    %156 = vector.broadcast %cst_34 : f32 to vector<4x128xf32>
    %157 = arith.mulf %156, %155 : vector<4x128xf32>
    %158 = arith.select %20, %153, %157 : vector<4x128xi1>, vector<4x128xf32>
    %159 = vector.extract_strided_slice %157 {offsets = [0, 0], sizes = [4, 32], strides = [1, 1]} : vector<4x128xf32> to vector<4x32xf32>
    %160 = vector.extract_strided_slice %157 {offsets = [0, 32], sizes = [4, 32], strides = [1, 1]} : vector<4x128xf32> to vector<4x32xf32>
    %161 = vector.extract_strided_slice %153 {offsets = [0, 64], sizes = [4, 32], strides = [1, 1]} : vector<4x128xf32> to vector<4x32xf32>
    %162 = vector.extract_strided_slice %157 {offsets = [0, 96], sizes = [4, 32], strides = [1, 1]} : vector<4x128xf32> to vector<4x32xf32>
    %163 = arith.mulf %160, %142 : vector<4x32xf32>
    %164 = arith.mulf %159, %161 : vector<4x32xf32>
    %165 = arith.addf %163, %164 : vector<4x32xf32>
    %166 = arith.select %38, %165, %142 : vector<4x32xi1>, vector<4x32xf32>
    %167 = math.tanh %166 : vector<4x32xf32>
    %168 = arith.mulf %162, %167 : vector<4x32xf32>
    %169 = arith.select %38, %168, %145 : vector<4x32xi1>, vector<4x32xf32>
    %170 = arith.truncf %169 : vector<4x32xf32> to vector<4x32xbf16>
    %cst_35 = arith.constant dense<0.000000e+00> : vector<4x256xf32>
    %171 = tpu.matmul %170, %9, %cst_35 {dimension_numbers = #tpu.dot_dimension_numbers<[1], [0], [0], [1], [0, 0, 1, 1], [], []>} : vector<4x32xbf16>, vector<32x256xbf16>, vector<4x256xf32> -> vector<4x256xf32>
    %172 = vector.extract_strided_slice %171 {offsets = [0, 0], sizes = [4, 128], strides = [1, 1]} : vector<4x256xf32> to vector<4x128xf32>
    %173 = vector.extract_strided_slice %171 {offsets = [0, 128], sizes = [4, 128], strides = [1, 1]} : vector<4x256xf32> to vector<4x128xf32>
    %174 = arith.select %14, %172, %173 : vector<4x128xi1>, vector<4x128xf32>
    %c20 = arith.constant 20 : index
    %c0_36 = arith.constant 0 : index
    %175 = vector.load %arg11[%c20, %c0_36] : memref<32x128xf32, #tpu.memory_space<vmem>>, vector<4x128xf32>
    %176 = arith.addf %175, %174 : vector<4x128xf32>
    %177 = math.tanh %176 : vector<4x128xf32>
    %cst_37 = arith.constant 1.000000e+00 : f32
    %178 = vector.broadcast %cst_37 : f32 to vector<4x128xf32>
    %179 = arith.addf %177, %178 : vector<4x128xf32>
    %cst_38 = arith.constant 5.000000e-01 : f32
    %180 = vector.broadcast %cst_38 : f32 to vector<4x128xf32>
    %181 = arith.mulf %180, %179 : vector<4x128xf32>
    %182 = arith.select %20, %177, %181 : vector<4x128xi1>, vector<4x128xf32>
    %183 = vector.extract_strided_slice %181 {offsets = [0, 0], sizes = [4, 32], strides = [1, 1]} : vector<4x128xf32> to vector<4x32xf32>
    %184 = vector.extract_strided_slice %181 {offsets = [0, 32], sizes = [4, 32], strides = [1, 1]} : vector<4x128xf32> to vector<4x32xf32>
    %185 = vector.extract_strided_slice %177 {offsets = [0, 64], sizes = [4, 32], strides = [1, 1]} : vector<4x128xf32> to vector<4x32xf32>
    %186 = vector.extract_strided_slice %181 {offsets = [0, 96], sizes = [4, 32], strides = [1, 1]} : vector<4x128xf32> to vector<4x32xf32>
    %187 = arith.mulf %184, %166 : vector<4x32xf32>
    %188 = arith.mulf %183, %185 : vector<4x32xf32>
    %189 = arith.addf %187, %188 : vector<4x32xf32>
    %190 = arith.select %41, %189, %166 : vector<4x32xi1>, vector<4x32xf32>
    %191 = math.tanh %190 : vector<4x32xf32>
    %192 = arith.mulf %186, %191 : vector<4x32xf32>
    %193 = arith.select %41, %192, %169 : vector<4x32xi1>, vector<4x32xf32>
    %194 = arith.truncf %193 : vector<4x32xf32> to vector<4x32xbf16>
    %cst_39 = arith.constant dense<0.000000e+00> : vector<4x256xf32>
    %195 = tpu.matmul %194, %9, %cst_39 {dimension_numbers = #tpu.dot_dimension_numbers<[1], [0], [0], [1], [0, 0, 1, 1], [], []>} : vector<4x32xbf16>, vector<32x256xbf16>, vector<4x256xf32> -> vector<4x256xf32>
    %196 = vector.extract_strided_slice %195 {offsets = [0, 0], sizes = [4, 128], strides = [1, 1]} : vector<4x256xf32> to vector<4x128xf32>
    %197 = vector.extract_strided_slice %195 {offsets = [0, 128], sizes = [4, 128], strides = [1, 1]} : vector<4x256xf32> to vector<4x128xf32>
    %198 = arith.select %14, %196, %197 : vector<4x128xi1>, vector<4x128xf32>
    %c24 = arith.constant 24 : index
    %c0_40 = arith.constant 0 : index
    %199 = vector.load %arg11[%c24, %c0_40] : memref<32x128xf32, #tpu.memory_space<vmem>>, vector<4x128xf32>
    %200 = arith.addf %199, %198 : vector<4x128xf32>
    %201 = math.tanh %200 : vector<4x128xf32>
    %cst_41 = arith.constant 1.000000e+00 : f32
    %202 = vector.broadcast %cst_41 : f32 to vector<4x128xf32>
    %203 = arith.addf %201, %202 : vector<4x128xf32>
    %cst_42 = arith.constant 5.000000e-01 : f32
    %204 = vector.broadcast %cst_42 : f32 to vector<4x128xf32>
    %205 = arith.mulf %204, %203 : vector<4x128xf32>
    %206 = arith.select %20, %201, %205 : vector<4x128xi1>, vector<4x128xf32>
    %207 = vector.extract_strided_slice %205 {offsets = [0, 0], sizes = [4, 32], strides = [1, 1]} : vector<4x128xf32> to vector<4x32xf32>
    %208 = vector.extract_strided_slice %205 {offsets = [0, 32], sizes = [4, 32], strides = [1, 1]} : vector<4x128xf32> to vector<4x32xf32>
    %209 = vector.extract_strided_slice %201 {offsets = [0, 64], sizes = [4, 32], strides = [1, 1]} : vector<4x128xf32> to vector<4x32xf32>
    %210 = vector.extract_strided_slice %205 {offsets = [0, 96], sizes = [4, 32], strides = [1, 1]} : vector<4x128xf32> to vector<4x32xf32>
    %211 = arith.mulf %208, %190 : vector<4x32xf32>
    %212 = arith.mulf %207, %209 : vector<4x32xf32>
    %213 = arith.addf %211, %212 : vector<4x32xf32>
    %214 = arith.select %44, %213, %190 : vector<4x32xi1>, vector<4x32xf32>
    %215 = math.tanh %214 : vector<4x32xf32>
    %216 = arith.mulf %210, %215 : vector<4x32xf32>
    %217 = arith.select %44, %216, %193 : vector<4x32xi1>, vector<4x32xf32>
    %218 = arith.truncf %217 : vector<4x32xf32> to vector<4x32xbf16>
    %cst_43 = arith.constant dense<0.000000e+00> : vector<4x256xf32>
    %219 = tpu.matmul %218, %9, %cst_43 {dimension_numbers = #tpu.dot_dimension_numbers<[1], [0], [0], [1], [0, 0, 1, 1], [], []>} : vector<4x32xbf16>, vector<32x256xbf16>, vector<4x256xf32> -> vector<4x256xf32>
    %220 = vector.extract_strided_slice %219 {offsets = [0, 0], sizes = [4, 128], strides = [1, 1]} : vector<4x256xf32> to vector<4x128xf32>
    %221 = vector.extract_strided_slice %219 {offsets = [0, 128], sizes = [4, 128], strides = [1, 1]} : vector<4x256xf32> to vector<4x128xf32>
    %222 = arith.select %14, %220, %221 : vector<4x128xi1>, vector<4x128xf32>
    %c28 = arith.constant 28 : index
    %c0_44 = arith.constant 0 : index
    %223 = vector.load %arg11[%c28, %c0_44] : memref<32x128xf32, #tpu.memory_space<vmem>>, vector<4x128xf32>
    %224 = arith.addf %223, %222 : vector<4x128xf32>
    %225 = math.tanh %224 : vector<4x128xf32>
    %cst_45 = arith.constant 1.000000e+00 : f32
    %226 = vector.broadcast %cst_45 : f32 to vector<4x128xf32>
    %227 = arith.addf %225, %226 : vector<4x128xf32>
    %cst_46 = arith.constant 5.000000e-01 : f32
    %228 = vector.broadcast %cst_46 : f32 to vector<4x128xf32>
    %229 = arith.mulf %228, %227 : vector<4x128xf32>
    %230 = arith.select %20, %225, %229 : vector<4x128xi1>, vector<4x128xf32>
    %231 = vector.extract_strided_slice %229 {offsets = [0, 0], sizes = [4, 32], strides = [1, 1]} : vector<4x128xf32> to vector<4x32xf32>
    %232 = vector.extract_strided_slice %229 {offsets = [0, 32], sizes = [4, 32], strides = [1, 1]} : vector<4x128xf32> to vector<4x32xf32>
    %233 = vector.extract_strided_slice %225 {offsets = [0, 64], sizes = [4, 32], strides = [1, 1]} : vector<4x128xf32> to vector<4x32xf32>
    %234 = vector.extract_strided_slice %229 {offsets = [0, 96], sizes = [4, 32], strides = [1, 1]} : vector<4x128xf32> to vector<4x32xf32>
    %235 = arith.mulf %232, %214 : vector<4x32xf32>
    %236 = arith.mulf %231, %233 : vector<4x32xf32>
    %237 = arith.addf %235, %236 : vector<4x32xf32>
    %238 = arith.select %47, %237, %214 : vector<4x32xi1>, vector<4x32xf32>
    %239 = math.tanh %238 : vector<4x32xf32>
    %240 = arith.mulf %234, %239 : vector<4x32xf32>
    %241 = arith.select %47, %240, %217 : vector<4x32xi1>, vector<4x32xf32>
    %242 = tpu.concatenate %62, %86, %110, %134, %158, %182, %206, %230 in 0 : vector<4x128xf32>, vector<4x128xf32>, vector<4x128xf32>, vector<4x128xf32>, vector<4x128xf32>, vector<4x128xf32>, vector<4x128xf32>, vector<4x128xf32> -> vector<32x128xf32>
    %c0_47 = arith.constant 0 : index
    %c0_48 = arith.constant 0 : index
    %243 = vector.load %arg9[%c0_47, %c0_48] : memref<32x128xf32, #tpu.memory_space<vmem>>, vector<32x128xf32>
    tpu.vector_store %arg9[%c0_47, %c0_48], %242 {strides = array<i32>} : memref<32x128xf32, #tpu.memory_space<vmem>>, vector<32x128xf32>,
    %244 = tpu.concatenate %70, %94, %118, %142, %166, %190, %214, %238 in 0 : vector<4x32xf32>, vector<4x32xf32>, vector<4x32xf32>, vector<4x32xf32>, vector<4x32xf32>, vector<4x32xf32>, vector<4x32xf32>, vector<4x32xf32> -> vector<32x32xf32>
    %c0_49 = arith.constant 0 : index
    %c0_50 = arith.constant 0 : index
    %245 = vector.load %arg10[%c0_49, %c0_50] : memref<32x32xf32, #tpu.memory_space<vmem>>, vector<32x32xf32>
    tpu.vector_store %arg10[%c0_49, %c0_50], %244 {strides = array<i32>} : memref<32x32xf32, #tpu.memory_space<vmem>>, vector<32x32xf32>,
    %246 = vector.extract_strided_slice %241 {offsets = [0, 0], sizes = [2, 32], strides = [1, 1]} : vector<4x32xf32> to vector<2x32xf32>
    %247 = vector.extract_strided_slice %241 {offsets = [2, 0], sizes = [2, 32], strides = [1, 1]} : vector<4x32xf32> to vector<2x32xf32>
    %c0_51 = arith.constant 0 : index
    %c0_52 = arith.constant 0 : index
    %248 = vector.load %arg5[%c0_51, %c0_52] : memref<1x32xf32, #tpu.memory_space<vmem>>, vector<1x32xf32>
    %249 = vector.broadcast %248 : vector<1x32xf32> to vector<2x32xf32>
    %250 = arith.mulf %246, %249 : vector<2x32xf32>
    %c0_53 = arith.constant 0 : index
    %c0_54 = arith.constant 0 : index
    %251 = vector.load %arg6[%c0_53, %c0_54] : memref<1x32xf32, #tpu.memory_space<vmem>>, vector<1x32xf32>
    %252 = vector.broadcast %251 : vector<1x32xf32> to vector<2x32xf32>
    %253 = arith.mulf %247, %252 : vector<2x32xf32>
    %254 = arith.addf %250, %253 : vector<2x32xf32>
    %cst_55 = arith.constant dense<0.000000e+00> : vector<2xf32>
    %255 = vector.multi_reduction <add>, %254, %cst_55 [1] : vector<2x32xf32> to vector<2xf32>
    %256 = vector.shape_cast %255 : vector<2xf32> to vector<2x1xf32>
    %c0_56 = arith.constant 0 : index
    %c0_57 = arith.constant 0 : index
    %257 = vector.load %arg7[%c0_56, %c0_57] : memref<1x1xf32, #tpu.memory_space<vmem>>, vector<1x1xf32>
    %258 = vector.broadcast %257 : vector<1x1xf32> to vector<2x1xf32>
    %259 = arith.addf %256, %258 : vector<2x1xf32>
    %cst_58 = arith.constant 5.000000e-01 : f32
    %260 = vector.broadcast %cst_58 : f32 to vector<2x1xf32>
    %261 = arith.mulf %260, %259 : vector<2x1xf32>
    %262 = math.tanh %261 : vector<2x1xf32>
    %cst_59 = arith.constant 1.000000e+00 : f32
    %263 = vector.broadcast %cst_59 : f32 to vector<2x1xf32>
    %264 = arith.addf %262, %263 : vector<2x1xf32>
    %cst_60 = arith.constant 5.000000e-01 : f32
    %265 = vector.broadcast %cst_60 : f32 to vector<2x1xf32>
    %266 = arith.mulf %265, %264 : vector<2x1xf32>
    %c0_61 = arith.constant 0 : index
    %c0_62 = arith.constant 0 : index
    %267 = vector.load %arg8[%c0_61, %c0_62] : memref<2x1xf32, #tpu.memory_space<vmem>>, vector<2x1xf32>
    tpu.vector_store %arg8[%c0_61, %c0_62], %266 {strides = array<i32>} : memref<2x1xf32, #tpu.memory_space<vmem>>, vector<2x1xf32>,
    return
  }
}

</mosaic_0001>

<bundles_post_ra>
// kernel: tpu_custom_call.1
= control target key start
LH: loop header
LB: loop body
LE: loop exit
PB: predicated region body
PF: predicated region fallthrough
CT: control target
= control target key end

     0   :  { %s1680_s0 = inlined_call_operand.vmem [shape: f32[32,64], index: 0, kind: input, shape index: {}]   ;;  %s1681_s1 = inlined_call_operand.hbm [shape: f32[32,128], index: 1, kind: input, shape index: {}]   ;;  %s1682_s2 = inlined_call_operand.vmem [shape: f32[32,1], index: 2, kind: input, shape index: {}]   ;;  %s1683_s3 = inlined_call_operand.hbm [shape: f32[64,128], index: 3, kind: input, shape index: {}]   ;;  %s1684_s4 = inlined_call_operand.hbm [shape: f32[32,256], index: 4, kind: input, shape index: {}]   ;;  %s1685_s5 = inlined_call_operand.vmem [shape: f32[1,32], index: 5, kind: input, shape index: {}]   ;;  %s1686_s6 = inlined_call_operand.vmem [shape: f32[1,32], index: 6, kind: input, shape index: {}]   ;;  %s1687_s7 = inlined_call_operand.<no memory space> [shape: f32[1,1], index: 7, kind: input, shape index: {}]   ;;  %s1688_s8 = inlined_call_operand.vmem [shape: f32[2,1], index: 8, kind: output, shape index: {0}]   ;;  %s1689_s9 = inlined_call_operand.hbm [shape: f32[32,128], index: 9, kind: output, shape index: {1}]   ;;  %s1690_s10 = inlined_call_operand.hbm [shape: f32[32,32], index: 10, kind: output, shape index: {2}]  }
   0x1   :  { %v16_v0 = vstv %s1687_s7 }
   0x2   :  { %17 = vst [vmem:[#allocation3] sm:$0x1] %v16_v0 }
   0x3   :  { %18 = vsyncpa [#allocation5], 0 }
   0x4   :  { %19 = vsyncpa [#allocation8], 0 }
   0x5   :  { %20 = vsyncpa [#allocation6], 0 }
   0x6   :  { %21 = vsyncpa [#allocation12], 0  ;;  %s1240_s15 = smov [#allocation7]   ;;  %s1241_s17 = smov [#allocation4]  }
   0x7   :  { %s43_s16 = sshll.u32 %s1240_s15, 4  ;;  %s29_s18 = sshll.u32 %s1241_s17, 4  ;;  %s44_s16 = int_to_ptr.vmem [resolvable:$true] %s43_s16  ;;  %s1311_s18 = int_to_ptr.vmem [resolvable:$true] %s29_s18 }
   0x8   :  { %s1122_s21 = scalar_lea.hbm %s1683_s3, 1024 }
   0x9   :  { %p1123_p0 = scmp.ne.s32.totalorder %s1683_s3, %s1122_s21  ;;  %p1126_p1 = scmp.lt.u32.totalorder %s1122_s21, %s1683_s3 }
   0xb   :  { %p1128_p2 = pnand %p1126_p1, %p1123_p0 }
   0xd   :  { %1131 = shalt.err (!%p1128_p2)
}
   0xe   :  { %s1132_s25 = scalar_lea.vmem %s44_s16, 1024  ;;  %p1137_p4 = scmp.lt.s32.totalorder %s44_s16, %s44_s16 }
   0xf   :  { %p1133_p3 = scmp.ne.s32.totalorder %s44_s16, %s1132_s25  ;;  %p1138_p5 = scmp.lt.s32.totalorder %s1132_s25, %s1132_s25 }
  0x11   :  { %p1139_p6 = por %p1138_p5, %p1137_p4 }
  0x13   :  { %p1140_p7 = pnand %p1139_p6, %p1133_p3 }
  0x15   :  { %1143 = shalt.err (!%p1140_p7)
}
  0x16   :  { %s1242_s26 = smov 128   ;;  %s1243_s27 = smov 8  }
  0x17   :  { %49 = dma.hbm_to_vmem [thread:$0]  %s1683_s3, 1024, %s44_s16, [#allocation8], %s1242_s26, %s1242_s26, %s1243_s27  }
  0x18   :  { %s1144_s12 = scalar_lea.hbm %s1681_s1, 512 }
  0x19   :  { %p1145_p8 = scmp.ne.s32.totalorder %s1681_s1, %s1144_s12  ;;  %p1148_p9 = scmp.lt.u32.totalorder %s1144_s12, %s1681_s1 }
  0x1b   :  { %p1150_p10 = pnand %p1148_p9, %p1145_p8 }
  0x1d   :  { %1153 = shalt.err (!%p1150_p10)
}
  0x1e   :  { %s1154_s19 = scalar_lea.vmem %s1311_s18, 512  ;;  %p1159_p12 = scmp.lt.s32.totalorder %s1311_s18, %s1311_s18 }
  0x1f   :  { %p1155_p11 = scmp.ne.s32.totalorder %s1311_s18, %s1154_s19  ;;  %p1160_p13 = scmp.lt.s32.totalorder %s1154_s19, %s1154_s19 }
  0x21   :  { %p1161_p0 = por %p1160_p13, %p1159_p12 }
  0x23   :  { %p1162_p1 = pnand %p1161_p0, %p1155_p11 }
  0x25   :  { %1165 = shalt.err (!%p1162_p1)
}
  0x26   :  { %35 = dma.hbm_to_vmem [thread:$0]  %s1681_s1, 512, %s1311_s18, [#allocation5], %s1242_s26, %s1242_s26, %s1243_s27  }
  0x27   :  { %s1244_s20 = smov [#allocation9]   ;;  %s1166_s7 = scalar_lea.hbm %s1684_s4, 1024 }
  0x28   :  { %s55_s21 = sshll.u32 %s1244_s20, 4  ;;  %p1167_p2 = scmp.ne.s32.totalorder %s1684_s4, %s1166_s7  ;;  %s56_s21 = int_to_ptr.vmem [resolvable:$true] %s55_s21 }
  0x29   :  { %p1170_p3 = scmp.lt.u32.totalorder %s1166_s7, %s1684_s4 }
  0x2b   :  { %p1172_p4 = pnand %p1170_p3, %p1167_p2 }
  0x2d   :  { %1175 = shalt.err (!%p1172_p4)
}
  0x2e   :  { %s1176_s30 = scalar_lea.vmem %s56_s21, 1024  ;;  %p1181_p6 = scmp.lt.s32.totalorder %s56_s21, %s56_s21 }
  0x2f   :  { %p1177_p5 = scmp.ne.s32.totalorder %s56_s21, %s1176_s30  ;;  %p1182_p7 = scmp.lt.s32.totalorder %s1176_s30, %s1176_s30 }
  0x31   :  { %p1183_p8 = por %p1182_p7, %p1181_p6 }
  0x33   :  { %p1184_p9 = pnand %p1183_p8, %p1177_p5 }
  0x35   :  { %1187 = shalt.err (!%p1184_p9)
}
  0x36   :  { %s1245_s1 = smov 256   ;;  %s1246_s18 = smov 16  }
  0x37   :  { %61 = dma.hbm_to_vmem [thread:$0]  %s1684_s4, 1024, %s56_s21, [#allocation8], %s1245_s1, %s1245_s1, %s1246_s18  }
  0x38   :  { %1232 = dma.done.wait [#allocation5], 512  }
  0x39   :  { %1233 = vsyncadd [#allocation5], 4294966784 }
  0x3a   :  { %1234 = dma.done.wait [#allocation8], 2048  }
  0x3b   :  { %1235 = vsyncadd [#allocation8], 4294965248  ;;  %v1247_v1 = vmov 0   ;;  %v84_v2 = vld [vmem:[#allocation7] sm:$0xff]  ;;  %v85_v3 = vld [vmem:[#allocation7 + $0x8] sm:$0xff]  ;;  %vm100_vm0 = vcmask 523264   ;;  %v172_v32 = vlaneseq }
  0x3c   :  { %246 = vmatprep.mubr.bf16.mxu1 %v1247_v1  ;;  %1087 = vset.pattern.permute.xlu0 %v1247_v1  ;;  %v86_v4 = vld [vmem:[#allocation7 + $0x10] sm:$0xff]  ;;  %v92_v5 = vpack.c.bf16 %v85_v3, %v84_v2  ;;  %v87_v6 = vld [vmem:[#allocation7 + $0x18] sm:$0xff]  ;;  %v88_v8 = vld [vmem:[#allocation7 + $0x20] sm:$0xff]  ;;  %s1248_s21 = smov 64   ;;  %s1249_s22 = smov 32   ;;  %vm210_vm4 = vcmask 261120  }
  0x3d   :  { %v93_v7 = vpack.c.bf16 %v87_v6, %v86_v4  ;;  %v89_v9 = vld [vmem:[#allocation7 + $0x28] sm:$0xff]  ;;  %v163_v11 = vld [vmem:[#allocation9 + $0x18] sm:$0xff]  ;;  %v160_v16 = vld [vmem:[#allocation9] sm:$0xff]  ;;  %v1402_v33 = vshrl.u32 %v172_v32, 7  ;;  %vm922_vm8 = vcmask 1043456   ;;  %s1250_s23 = smov 96  }
  0x3e   :  { %v161_v10 = vld [vmem:[#allocation9 + $0x8] sm:$0xff]  ;;  %1062 = vmatprep.subr.bf16.mxu0 %v92_v5  ;;  %v78_v12 = vld [vmem:[%s1680_s0] sm:$0xff]  ;;  %v162_v17 = vld [vmem:[#allocation9 + $0x10] sm:$0xff]  ;;  %v94_v18 = vpack.c.bf16 %v89_v9, %v88_v8  ;;  %vm988_vm15 = vcmask 259076  }
  0x3f   :  { %v79_v13 = vld [vmem:[%s1680_s0 + $0x8] sm:$0xff]  ;;  %1063 = vmatpush3.bf16.msra.mxu0 %v92_v5  ;;  %v1368_v14 = vpack.c.bf16 %v163_v11, %v161_v10  ;;  %v90_v19 = vld [vmem:[#allocation7 + $0x30] sm:$0xff]  ;;  %v1370_v20 = vpack.c.bf16 %v162_v17, %v160_v16  ;;  %v167_v22 = vld [vmem:[#allocation9 + $0x38] sm:$0xff]  ;;  %vm174_vm1 = vcmp.lt.s32.totalorder %v1402_v33, 2  ;;  %v178_v16 = vand.u32 127, %v172_v32 }
  0x40   :  { %v82_v15 = vpack.c.bf16 %v79_v13, %v78_v12  ;;  %1064 = vmatprep.subr.bf16.mxu0 %v93_v7  ;;  %v165_v21 = vld [vmem:[#allocation9 + $0x28] sm:$0xff]  ;;  %v91_v23 = vld [vmem:[#allocation7 + $0x38] sm:$0xff]  ;;  %v164_v25 = vld [vmem:[#allocation9 + $0x20] sm:$0xff] }
  0x41   :  { %214 = vmatprep.subr.bf16.mxu1 %v1368_v14  ;;  %v1374_v24 = vpack.c.bf16 %v167_v22, %v165_v21  ;;  %v166_v26 = vld [vmem:[#allocation9 + $0x30] sm:$0xff]  ;;  %v95_v28 = vpack.c.bf16 %v91_v23, %v90_v19  ;;  %v96_v40 = vld [vmem:[#allocation4] sm:$0xff]  ;;  %v99_v42 = vld [vmem:[#allocation4 + $0x18] sm:$0xff]  ;;  %vm179_vm5 = vcmp.ge.s32.totalorder %v178_v16, 64  ;;  %vm180_vm6 = vcmp.lt.s32.totalorder %v178_v16, 96 }
  0x42   :  { %1070 = vmatprep.mubr.msk.bf16.mxu0 %vm100_vm0, %v82_v15  ;;  %215 = vmatpush1.bf16.msra.mxu1 %v1370_v20  ;;  %v1377_v27 = vpack.c.bf16 %v166_v26, %v164_v25  ;;  %v80_v29 = vld [vmem:[%s1680_s0 + $0x10] sm:$0xff]  ;;  %v81_v30 = vld [vmem:[%s1680_s0 + $0x18] sm:$0xff]  ;;  %v182_v53 = vld [vmem:[%s1682_s2] sm:$0xff] }
  0x43   :  { %1065 = vmatpush3.bf16.msra.mxu0 %v93_v7  ;;  %216 = vmatprep.subr.bf16.mxu1 %v1374_v24  ;;  %v83_v31 = vpack.c.bf16 %v81_v30, %v80_v29  ;;  %v98_v38 = vld [vmem:[#allocation4 + $0x10] sm:$0xff]  ;;  %v97_v45 = vld [vmem:[#allocation4 + $0x8] sm:$0xff]  ;;  %vm186_vm2 = vcmp.ne.f32.partialorder %v182_v53, 0.0  ;;  %vm1435_vm7 = vmand %vm179_vm5, %vm180_vm6 }
  0x44   :  { %1066 = vmatprep.subr.bf16.mxu0 %v94_v18  ;;  %v190_v55 = vsel %vm186_vm2, 1, %v1247_v1 }
  0x46   :  { %217 = vmatpush1.bf16.msra.mxu1 %v1377_v27 }
  0x47   :  { %1067 = vmatpush3.bf16.msra.mxu0 %v94_v18  ;;  %288 = vmatprep.subr.bf16.mxu1 %v1368_v14 }
  0x48   :  { %1068 = vmatprep.subr.bf16.mxu0 %v95_v28 }
  0x49   :  { %247 = vmatmul.mubr.bf16.vlgmr.msra.gmra.mrb[0].mxu1 %v1247_v1 }
  0x4a   :  { %289 = vmatpush1.bf16.msra.mxu1 %v1370_v20  ;;  %320 = vmatprep.mubr.bf16.mxu1 %v1247_v1 }
  0x4b   :  { %1069 = vmatpush3.bf16.msra.mxu0 %v95_v28  ;;  %290 = vmatprep.subr.bf16.mxu1 %v1374_v24 }
  0x4c   :  { %382 = vmatprep.subr.bf16.mxu0 %v1368_v14 }
  0x4e   :  { %1071 = vmatmul.mubr.msk.bf16.vlgmr.msra.gmra.mrb[0].mxu0 %vm100_vm0, %v83_v31  ;;  %291 = vmatpush1.bf16.msra.mxu1 %v1377_v27 }
  0x4f   :  { %383 = vmatpush1.bf16.msra.mxu0 %v1370_v20  ;;  %414 = vmatprep.mubr.bf16.mxu0 %v1247_v1 }
  0x50   :  { %384 = vmatprep.subr.bf16.mxu0 %v1374_v24  ;;  %466 = vmatprep.subr.bf16.mxu1 %v1368_v14 }
  0x53   :  { %385 = vmatpush1.bf16.msra.mxu0 %v1377_v27 }
  0x54   :  { %560 = vmatprep.subr.bf16.mxu0 %v1368_v14 }
 0x11c   :  { %v248_v34 = vpop.f32.mrb[0].mxu1 }
 0x11d   :  { %v250_v35 = vpop.f32.mrb[1].mxu1 }
 0x11e   :  { %v255_v36 = vsel %vm174_vm1, %v248_v34, %v250_v35  ;;  %v252_v37 = vpop.f32.mrb[2].mxu1 }
 0x11f   :  { %v253_v39 = vpop.f32.mrb[3].mxu1 }
 0x121   :  { %v1072_v41 = vpop.f32.mrb[0].mxu0 }
 0x122   :  { %v150_v43 = vadd.f32 %v1072_v41, %v98_v38  ;;  %v141_v44 = vpop.f32.mrb[1].mxu0  ;;  %v183_v41 = vld [vmem:[%s1682_s2 + $0x8] sm:$0xff] }
 0x123   :  { %v142_v46 = vadd.f32 %v141_v44, %v96_v40  ;;  %v1073_v47 = vpop.f32.mrb[2].mxu0  ;;  %vm187_vm9 = vcmp.ne.f32.partialorder %v183_v41, 0.0 }
 0x124   :  { %158 = vst [vmem:[#allocation2 + $0x10] sm:$0xff] %v150_v43  ;;  %v153_v48 = vadd.f32 %v1073_v47, %v99_v42  ;;  %v144_v49 = vpop.f32.mrb[3].mxu0  ;;  %v195_v43 = vsel %vm187_vm9, 1, %v1247_v1 }
 0x125   :  { %156 = vst [vmem:[#allocation2] sm:$0xff] %v142_v46  ;;  %v145_v50 = vadd.f32 %v144_v49, %v97_v45 }
 0x126   :  { %159 = vst [vmem:[#allocation2 + $0x18] sm:$0xff] %v153_v48 }
 0x127   :  { %157 = vst [vmem:[#allocation2 + $0x8] sm:$0xff] %v145_v50 }
 0x12c   :  { %v256_v51 = vld [vmem:[#allocation2] sm:$0xf]  ;;  %v330_v11 = vld [vmem:[#allocation2 + $0x4] sm:$0xf] }
 0x12d   :  { %v257_v52 = vadd.f32 %v256_v51, %v255_v36 }
 0x12f   :  { %1088 = vtanh.f32 %v257_v52 }
 0x139   :  { %v1089_v54 = vpop.eup %1088 }
 0x13a   :  { %264 = vrot.lane.b32.xlu0 %v1089_v54, %s1248_s21  ;;  %v259_v56 = vadd.f32 1.0, %v1089_v54 }
 0x13c   :  { %v260_v57 = vmul.f32 0.5, %v259_v56 }
 0x13e   :  { %192 = vperm.xlu0 %1087, %v190_v55   ;;  %v262_v61 = vmul.f32 0.0, %v260_v57  ;;  %v261_v25 = vsel %vm1435_vm7, %v1089_v54, %v260_v57  ;;  %v424_v55 = vld [vmem:[#allocation2 + $0x8] sm:$0xf] }
 0x1ac   :  { %v265_v58 = vpop.permute.xlu0 %264 }
 0x1ad   :  { %v267_v59 = vmul.f32 %v265_v58, %v260_v57 }
 0x1af   :  { %269 = vrot.lane.b32.xlu1 %v267_v59, %s1249_s22 }
 0x1bd   :  { %v1413_v60 = vpop.permute.xlu0 %192 }
 0x1be   :  { %vm194_vm3 = vcmp.eq.s32.totalorder %v1413_v60, 1 }
 0x221   :  { %v270_v62 = vpop.permute.xlu1 %269 }
 0x222   :  { %v272_v63 = vadd.f32 %v270_v62, %v262_v61 }
 0x224   :  { %v1418_v0 = vsel %vm194_vm3, %v272_v63, 0.0 }
 0x225   :  { %1090 = vtanh.f32 %v1418_v0  ;;  %v353_v30 = vrot.slane %v1418_v0, 4 }
 0x22f   :  { %v1091_v2 = vpop.eup %1090 }
 0x230   :  { %276 = vrot.lane.b32.xlu1 %v1091_v2, %s1248_s21 }
 0x2a2   :  { %v277_v3 = vpop.permute.xlu1 %276 }
 0x2a3   :  { %v279_v4 = vmul.f32 %v277_v3, %v260_v57 }
 0x2a5   :  { %v280_v5 = vsel %vm194_vm3, %v279_v4, 0.0 }
 0x2a6   :  { %v281_v6 = vpack.c.bf16 %v280_v5, %v280_v5  ;;  %v371_v42 = vrot.slane %v280_v5, 4 }
 0x2a8   :  { %283 = vrot.lane.b32.xlu1 %v281_v6, %s1249_s22 }
 0x31a   :  { %v284_v7 = vpop.permute.xlu1 %283 }
 0x31b   :  { %1046 = vmatmul.mubr.msk.bf16.vlgmr.msra.gmra.mrb[4].mxu1 %vm210_vm4, %v284_v7 }
 0x31c   :  { %467 = vmatpush1.bf16.msra.mxu1 %v1370_v20  ;;  %498 = vmatprep.mubr.bf16.mxu1 %v1247_v1 }
 0x31d   :  { %468 = vmatprep.subr.bf16.mxu1 %v1374_v24 }
 0x320   :  { %469 = vmatpush1.bf16.msra.mxu1 %v1377_v27 }
 0x321   :  { %644 = vmatprep.subr.bf16.mxu1 %v1368_v14 }
 0x3ee   :  { %v322_v8 = vpop.f32.mrb[4].mxu1 }
 0x3ef   :  { %v324_v9 = vpop.f32.mrb[5].mxu1 }
 0x3f0   :  { %v329_v10 = vsel %vm174_vm1, %v322_v8, %v324_v9  ;;  %v326_v12 = vpop.f32.mrb[6].mxu1 }
 0x3f1   :  { %v331_v13 = vadd.f32 %v330_v11, %v329_v10  ;;  %v327_v15 = vpop.f32.mrb[7].mxu1 }
 0x3f3   :  { %1092 = vtanh.f32 %v331_v13 }
 0x3fd   :  { %v1093_v17 = vpop.eup %1092 }
 0x3fe   :  { %338 = vrot.lane.b32.xlu0 %v1093_v17, %s1248_s21  ;;  %v333_v18 = vadd.f32 1.0, %v1093_v17 }
 0x400   :  { %v334_v19 = vmul.f32 0.5, %v333_v18 }
 0x402   :  { %v335_v22 = vsel %vm1435_vm7, %v1093_v17, %v334_v19  ;;  %v336_v31 = vmul.f32 %v334_v19, %v1418_v0 }
 0x403   :  { %v911_v23 = vrot.slane %v335_v22, 4 }
 0x405   :  { %v923_v26 = vsel %vm922_vm8, %v261_v25, %v911_v23  ;;  %v508_v23 = vld [vmem:[#allocation2 + $0xc] sm:$0xf] }
 0x406   :  { %927 = vst [vmem:[#allocation10] sm:$0xff] %v923_v26 }
 0x470   :  { %v339_v28 = vpop.permute.xlu0 %338 }
 0x471   :  { %v341_v29 = vmul.f32 %v339_v28, %v334_v19 }
 0x473   :  { %343 = vrot.lane.b32.xlu1 %v341_v29, %s1249_s22 }
 0x477   :  { %354 = vrot.lane.b32.xlu1 %v353_v30, %s1250_s23 }
 0x4e5   :  { %v344_v32 = vpop.permute.xlu1 %343 }
 0x4e6   :  { %v346_v34 = vadd.f32 %v344_v32, %v336_v31 }
 0x4e8   :  { %v348_v35 = vrot.slane %v346_v34, 4 }
 0x4e9   :  { %v355_v36 = vpop.permute.xlu1 %354 }
 0x4ea   :  { %349 = vrot.lane.b32.xlu0 %v348_v35, %s1250_s23 }
 0x55c   :  { %v350_v37 = vpop.permute.xlu0 %349 }
 0x55d   :  { %v1451_v38 = vsel %vm194_vm3, %v350_v37, %v355_v36 }
 0x55e   :  { %1094 = vtanh.f32 %v1451_v38  ;;  %v431_v60 = vrot.slane %v1451_v38, 4 }
 0x568   :  { %v1095_v39 = vpop.eup %1094 }
 0x569   :  { %v360_v40 = vrot.slane %v1095_v39, 4 }
 0x56b   :  { %361 = vrot.lane.b32.xlu0 %v360_v40, %s1250_s23 }
 0x56f   :  { %372 = vrot.lane.b32.xlu0 %v371_v42, %s1249_s22 }
 0x573   :  { %197 = vperm.xlu0 %1087, %v195_v43  }
 0x5dd   :  { %v362_v44 = vpop.permute.xlu0 %361 }
 0x5de   :  { %v364_v45 = vmul.f32 %v362_v44, %v334_v19 }
 0x5e0   :  { %v366_v46 = vrot.slane %v364_v45, 4 }
 0x5e1   :  { %v373_v47 = vpop.permute.xlu0 %372 }
 0x5e2   :  { %367 = vrot.lane.b32.xlu1 %v366_v46, %s1249_s22 }
 0x5f2   :  { %v1476_v4 = vpop.permute.xlu0 %197 }
 0x5f3   :  { %vm199_vm10 = vcmp.eq.s32.totalorder %v1476_v4, 1 }
 0x654   :  { %v368_v48 = vpop.permute.xlu1 %367 }
 0x655   :  { %v375_v49 = vsel %vm194_vm3, %v368_v48, %v373_v47 }
 0x656   :  { %v376_v50 = vpack.c.bf16 %v375_v49, %v375_v49  ;;  %v454_v3 = vrot.slane %v375_v49, 4  ;;  %v184_v49 = vld [vmem:[%s1682_s2 + $0x10] sm:$0xff] }
 0x657   :  { %vm188_vm11 = vcmp.ne.f32.partialorder %v184_v49, 0.0 }
 0x658   :  { %v378_v51 = vrot.slane %v376_v50, 2 }
 0x65a   :  { %1047 = vmatmul.mubr.msk.bf16.vlgmr.msra.gmra.mrb[4].mxu0 %vm210_vm4, %v378_v51  ;;  %v200_v51 = vsel %vm188_vm11, 1, %v1247_v1 }
 0x65b   :  { %561 = vmatpush1.bf16.msra.mxu0 %v1370_v20  ;;  %592 = vmatprep.mubr.bf16.mxu0 %v1247_v1 }
 0x65c   :  { %562 = vmatprep.subr.bf16.mxu0 %v1374_v24 }
 0x65f   :  { %563 = vmatpush1.bf16.msra.mxu0 %v1377_v27 }
 0x660   :  { %738 = vmatprep.subr.bf16.mxu0 %v1368_v14 }
 0x72d   :  { %v416_v52 = vpop.f32.mrb[4].mxu0 }
 0x72e   :  { %v418_v53 = vpop.f32.mrb[5].mxu0 }
 0x72f   :  { %v423_v54 = vsel %vm174_vm1, %v416_v52, %v418_v53  ;;  %v420_v56 = vpop.f32.mrb[6].mxu0 }
 0x730   :  { %v425_v57 = vadd.f32 %v424_v55, %v423_v54  ;;  %v421_v58 = vpop.f32.mrb[7].mxu0 }
 0x732   :  { %1096 = vtanh.f32 %v425_v57 }
 0x73c   :  { %v1097_v59 = vpop.eup %1096 }
 0x73d   :  { %437 = vrot.lane.b32.xlu1 %v1097_v59, %s1248_s21  ;;  %v427_v61 = vadd.f32 1.0, %v1097_v59 }
 0x73f   :  { %v428_v62 = vmul.f32 0.5, %v427_v61 }
 0x741   :  { %432 = vrot.lane.b32.xlu1 %v431_v60, %s1249_s22 }
 0x7af   :  { %v438_v63 = vpop.permute.xlu1 %437 }
 0x7b0   :  { %v440_v2 = vmul.f32 %v438_v63, %v428_v62  ;;  %v602_v63 = vld [vmem:[#allocation2 + $0x10] sm:$0xf] }
 0x7b2   :  { %442 = vrot.lane.b32.xlu0 %v440_v2, %s1249_s22 }
 0x7b3   :  { %v433_v5 = vpop.permute.xlu1 %432 }
 0x7b4   :  { %v435_v6 = vmul.f32 %v433_v5, %v428_v62 }
 0x7b6   :  { %455 = vrot.lane.b32.xlu0 %v454_v3, %s1250_s23 }
 0x824   :  { %v443_v7 = vpop.permute.xlu0 %442 }
 0x825   :  { %v445_v8 = vadd.f32 %v443_v7, %v435_v6 }
 0x827   :  { %v1481_v9 = vsel %vm199_vm10, %v445_v8, %v433_v5 }
 0x828   :  { %1098 = vtanh.f32 %v1481_v9  ;;  %v456_v13 = vpop.permute.xlu0 %455  ;;  %v531_v39 = vrot.slane %v1481_v9, 4 }
 0x832   :  { %v1099_v10 = vpop.eup %1098 }
 0x833   :  { %449 = vrot.lane.b32.xlu1 %v1099_v10, %s1248_s21 }
 0x8a5   :  { %v450_v11 = vpop.permute.xlu1 %449 }
 0x8a6   :  { %v452_v12 = vmul.f32 %v450_v11, %v428_v62 }
 0x8a8   :  { %v458_v15 = vsel %vm199_vm10, %v452_v12, %v456_v13 }
 0x8a9   :  { %v459_v16 = vpack.c.bf16 %v458_v15, %v458_v15  ;;  %v549_v50 = vrot.slane %v458_v15, 4 }
 0x8ab   :  { %461 = vrot.lane.b32.xlu1 %v459_v16, %s1249_s22 }
 0x91d   :  { %v462_v17 = vpop.permute.xlu1 %461 }
 0x91e   :  { %1048 = vmatmul.mubr.msk.bf16.vlgmr.msra.gmra.mrb[8].mxu1 %vm210_vm4, %v462_v17 }
 0x91f   :  { %645 = vmatpush1.bf16.msra.mxu1 %v1370_v20  ;;  %676 = vmatprep.mubr.bf16.mxu1 %v1247_v1 }
 0x920   :  { %646 = vmatprep.subr.bf16.mxu1 %v1374_v24 }
 0x923   :  { %647 = vmatpush1.bf16.msra.mxu1 %v1377_v27 }
 0x924   :  { %822 = vmatprep.subr.bf16.mxu1 %v1368_v14  ;;  %v429_v14 = vsel %vm1435_vm7, %v1097_v59, %v428_v62 }
 0x9f1   :  { %v500_v18 = vpop.f32.mrb[8].mxu1 }
 0x9f2   :  { %v502_v19 = vpop.f32.mrb[9].mxu1 }
 0x9f3   :  { %v507_v22 = vsel %vm174_vm1, %v500_v18, %v502_v19  ;;  %v504_v25 = vpop.f32.mrb[10].mxu1 }
 0x9f4   :  { %v509_v26 = vadd.f32 %v508_v23, %v507_v22  ;;  %v505_v28 = vpop.f32.mrb[11].mxu1 }
 0x9f6   :  { %1100 = vtanh.f32 %v509_v26 }
 0xa00   :  { %v1101_v29 = vpop.eup %1100 }
 0xa01   :  { %516 = vrot.lane.b32.xlu0 %v1101_v29, %s1248_s21  ;;  %v511_v30 = vadd.f32 1.0, %v1101_v29 }
 0xa03   :  { %v512_v31 = vmul.f32 0.5, %v511_v30 }
 0xa05   :  { %v513_v32 = vsel %vm1435_vm7, %v1101_v29, %v512_v31  ;;  %v514_v40 = vmul.f32 %v512_v31, %v1481_v9 }
 0xa06   :  { %v914_v34 = vrot.slane %v513_v32, 4 }
 0xa08   :  { %v924_v35 = vsel %vm922_vm8, %v429_v14, %v914_v34  ;;  %v686_v14 = vld [vmem:[#allocation2 + $0x14] sm:$0xf] }
 0xa09   :  { %928 = vst [vmem:[#allocation10 + $0x8] sm:$0xff] %v924_v35 }
 0xa73   :  { %v517_v36 = vpop.permute.xlu0 %516 }
 0xa74   :  { %v519_v37 = vmul.f32 %v517_v36, %v512_v31 }
 0xa76   :  { %521 = vrot.lane.b32.xlu1 %v519_v37, %s1249_s22 }
 0xa7a   :  { %532 = vrot.lane.b32.xlu1 %v531_v39, %s1250_s23 }
 0xae8   :  { %v522_v41 = vpop.permute.xlu1 %521 }
 0xae9   :  { %v524_v42 = vadd.f32 %v522_v41, %v514_v40 }
 0xaeb   :  { %v526_v43 = vrot.slane %v524_v42, 4 }
 0xaec   :  { %v533_v44 = vpop.permute.xlu1 %532 }
 0xaed   :  { %527 = vrot.lane.b32.xlu0 %v526_v43, %s1250_s23 }
 0xb5f   :  { %v528_v45 = vpop.permute.xlu0 %527 }
 0xb60   :  { %v1509_v46 = vsel %vm199_vm10, %v528_v45, %v533_v44 }
 0xb61   :  { %1102 = vtanh.f32 %v1509_v46  ;;  %v609_v6 = vrot.slane %v1509_v46, 4 }
 0xb6b   :  { %v1103_v47 = vpop.eup %1102 }
 0xb6c   :  { %v538_v48 = vrot.slane %v1103_v47, 4 }
 0xb6e   :  { %539 = vrot.lane.b32.xlu0 %v538_v48, %s1250_s23 }
 0xb72   :  { %550 = vrot.lane.b32.xlu0 %v549_v50, %s1249_s22 }
 0xb76   :  { %202 = vperm.xlu0 %1087, %v200_v51  }
 0xbe0   :  { %v540_v52 = vpop.permute.xlu0 %539 }
 0xbe1   :  { %v542_v53 = vmul.f32 %v540_v52, %v512_v31 }
 0xbe3   :  { %v544_v54 = vrot.slane %v542_v53, 4 }
 0xbe4   :  { %v551_v55 = vpop.permute.xlu0 %550 }
 0xbe5   :  { %545 = vrot.lane.b32.xlu1 %v544_v54, %s1249_s22 }
 0xbf5   :  { %v1533_v13 = vpop.permute.xlu0 %202 }
 0xbf6   :  { %vm204_vm12 = vcmp.eq.s32.totalorder %v1533_v13, 1 }
 0xc57   :  { %v546_v56 = vpop.permute.xlu1 %545 }
 0xc58   :  { %v553_v57 = vsel %vm199_vm10, %v546_v56, %v551_v55  ;;  %v185_v56 = vld [vmem:[%s1682_s2 + $0x18] sm:$0xff] }
 0xc59   :  { %v554_v58 = vpack.c.bf16 %v553_v57, %v553_v57  ;;  %v632_v12 = vrot.slane %v553_v57, 4  ;;  %vm189_vm13 = vcmp.ne.f32.partialorder %v185_v56, 0.0 }
 0xc5b   :  { %v556_v59 = vrot.slane %v554_v58, 2  ;;  %v205_v58 = vsel %vm189_vm13, 1, %v1247_v1 }
 0xc5d   :  { %1049 = vmatmul.mubr.msk.bf16.vlgmr.msra.gmra.mrb[8].mxu0 %vm210_vm4, %v556_v59 }
 0xc5e   :  { %739 = vmatpush1.bf16.msra.mxu0 %v1370_v20  ;;  %770 = vmatprep.mubr.bf16.mxu0 %v1247_v1 }
 0xc5f   :  { %740 = vmatprep.subr.bf16.mxu0 %v1374_v24 }
 0xc62   :  { %741 = vmatpush1.bf16.msra.mxu0 %v1377_v27 }
 0xd30   :  { %v594_v60 = vpop.f32.mrb[8].mxu0 }
 0xd31   :  { %v596_v61 = vpop.f32.mrb[9].mxu0 }
 0xd32   :  { %v601_v62 = vsel %vm174_vm1, %v594_v60, %v596_v61  ;;  %v598_v2 = vpop.f32.mrb[10].mxu0 }
 0xd33   :  { %v603_v3 = vadd.f32 %v602_v63, %v601_v62  ;;  %v599_v4 = vpop.f32.mrb[11].mxu0 }
 0xd35   :  { %1104 = vtanh.f32 %v603_v3 }
 0xd3f   :  { %v1105_v5 = vpop.eup %1104 }
 0xd40   :  { %615 = vrot.lane.b32.xlu1 %v1105_v5, %s1248_s21  ;;  %v605_v7 = vadd.f32 1.0, %v1105_v5 }
 0xd42   :  { %v606_v8 = vmul.f32 0.5, %v605_v7  ;;  %v780_v7 = vld [vmem:[#allocation2 + $0x18] sm:$0xf] }
 0xd44   :  { %610 = vrot.lane.b32.xlu1 %v609_v6, %s1249_s22 }
 0xdb2   :  { %v616_v10 = vpop.permute.xlu1 %615 }
 0xdb3   :  { %v618_v11 = vmul.f32 %v616_v10, %v606_v8 }
 0xdb5   :  { %620 = vrot.lane.b32.xlu0 %v618_v11, %s1249_s22 }
 0xdb6   :  { %v611_v15 = vpop.permute.xlu1 %610 }
 0xdb7   :  { %v613_v16 = vmul.f32 %v611_v15, %v606_v8 }
 0xdb9   :  { %633 = vrot.lane.b32.xlu0 %v632_v12, %s1250_s23 }
 0xe27   :  { %v621_v17 = vpop.permute.xlu0 %620 }
 0xe28   :  { %v623_v18 = vadd.f32 %v621_v17, %v613_v16 }
 0xe2a   :  { %v1538_v19 = vsel %vm204_vm12, %v623_v18, %v611_v15 }
 0xe2b   :  { %1106 = vtanh.f32 %v1538_v19  ;;  %v634_v26 = vpop.permute.xlu0 %633  ;;  %v709_v45 = vrot.slane %v1538_v19, 4 }
 0xe35   :  { %v1107_v22 = vpop.eup %1106 }
 0xe36   :  { %627 = vrot.lane.b32.xlu1 %v1107_v22, %s1248_s21 }
 0xea8   :  { %v628_v23 = vpop.permute.xlu1 %627 }
 0xea9   :  { %v630_v25 = vmul.f32 %v628_v23, %v606_v8 }
 0xeab   :  { %v636_v28 = vsel %vm204_vm12, %v630_v25, %v634_v26 }
 0xeac   :  { %v637_v29 = vpack.c.bf16 %v636_v28, %v636_v28  ;;  %v727_v57 = vrot.slane %v636_v28, 4 }
 0xeae   :  { %639 = vrot.lane.b32.xlu1 %v637_v29, %s1249_s22 }
 0xf20   :  { %v640_v30 = vpop.permute.xlu1 %639 }
 0xf21   :  { %1050 = vmatmul.mubr.msk.bf16.vlgmr.msra.gmra.mrb[12].mxu1 %vm210_vm4, %v640_v30 }
 0xf22   :  { %823 = vmatpush1.bf16.msra.mxu1 %v1370_v20  ;;  %854 = vmatprep.mubr.bf16.mxu1 %v1247_v1 }
 0xf23   :  { %824 = vmatprep.subr.bf16.mxu1 %v1374_v24 }
 0xf26   :  { %825 = vmatpush1.bf16.msra.mxu1 %v1377_v27  ;;  %v607_v27 = vsel %vm1435_vm7, %v1105_v5, %v606_v8 }
 0xff4   :  { %v678_v31 = vpop.f32.mrb[12].mxu1 }
 0xff5   :  { %v680_v32 = vpop.f32.mrb[13].mxu1 }
 0xff6   :  { %v685_v34 = vsel %vm174_vm1, %v678_v31, %v680_v32  ;;  %v682_v35 = vpop.f32.mrb[14].mxu1 }
 0xff7   :  { %v687_v36 = vadd.f32 %v686_v14, %v685_v34  ;;  %v683_v37 = vpop.f32.mrb[15].mxu1 }
 0xff9   :  { %1108 = vtanh.f32 %v687_v36 }
0x1003   :  { %v1109_v39 = vpop.eup %1108 }
0x1004   :  { %694 = vrot.lane.b32.xlu0 %v1109_v39, %s1248_s21  ;;  %v689_v20 = vadd.f32 1.0, %v1109_v39 }
0x1006   :  { %v690_v40 = vmul.f32 0.5, %v689_v20 }
0x1008   :  { %v691_v24 = vsel %vm1435_vm7, %v1109_v39, %v690_v40  ;;  %v692_v47 = vmul.f32 %v690_v40, %v1538_v19 }
0x1009   :  { %v917_v41 = vrot.slane %v691_v24, 4  ;;  %v864_v24 = vld [vmem:[#allocation2 + $0x1c] sm:$0xf] }
0x100b   :  { %v925_v42 = vsel %vm922_vm8, %v607_v27, %v917_v41 }
0x100c   :  { %929 = vst [vmem:[#allocation10 + $0x10] sm:$0xff] %v925_v42 }
0x1076   :  { %v695_v43 = vpop.permute.xlu0 %694 }
0x1077   :  { %v697_v44 = vmul.f32 %v695_v43, %v690_v40 }
0x1079   :  { %699 = vrot.lane.b32.xlu1 %v697_v44, %s1249_s22 }
0x107d   :  { %710 = vrot.lane.b32.xlu1 %v709_v45, %s1250_s23 }
0x10eb   :  { %v700_v48 = vpop.permute.xlu1 %699 }
0x10ec   :  { %v702_v49 = vadd.f32 %v700_v48, %v692_v47 }
0x10ee   :  { %v704_v50 = vrot.slane %v702_v49, 4 }
0x10ef   :  { %v711_v51 = vpop.permute.xlu1 %710 }
0x10f0   :  { %705 = vrot.lane.b32.xlu0 %v704_v50, %s1250_s23 }
0x1162   :  { %v706_v52 = vpop.permute.xlu0 %705 }
0x1163   :  { %v1565_v53 = vsel %vm204_vm12, %v706_v52, %v711_v51 }
0x1164   :  { %1110 = vtanh.f32 %v1565_v53  ;;  %v787_v13 = vrot.slane %v1565_v53, 4 }
0x116e   :  { %v1111_v54 = vpop.eup %1110 }
0x116f   :  { %v716_v55 = vrot.slane %v1111_v54, 4 }
0x1171   :  { %717 = vrot.lane.b32.xlu0 %v716_v55, %s1250_s23 }
0x1175   :  { %728 = vrot.lane.b32.xlu0 %v727_v57, %s1249_s22 }
0x1179   :  { %207 = vperm.xlu0 %1087, %v205_v58  }
0x11e3   :  { %v718_v59 = vpop.permute.xlu0 %717 }
0x11e4   :  { %v720_v60 = vmul.f32 %v718_v59, %v690_v40 }
0x11e6   :  { %v722_v61 = vrot.slane %v720_v60, 4 }
0x11e7   :  { %v729_v62 = vpop.permute.xlu0 %728 }
0x11e8   :  { %723 = vrot.lane.b32.xlu1 %v722_v61, %s1249_s22 }
0x11f8   :  { %v1585_v23 = vpop.permute.xlu0 %207 }
0x11f9   :  { %vm209_vm14 = vcmp.eq.s32.totalorder %v1585_v23, 1 }
0x125a   :  { %v724_v63 = vpop.permute.xlu1 %723 }
0x125b   :  { %v731_v2 = vsel %vm204_vm12, %v724_v63, %v729_v62 }
0x125c   :  { %v732_v3 = vpack.c.bf16 %v731_v2, %v731_v2  ;;  %v810_v22 = vrot.slane %v731_v2, 4 }
0x125e   :  { %v734_v4 = vrot.slane %v732_v3, 2 }
0x1260   :  { %1051 = vmatmul.mubr.msk.bf16.vlgmr.msra.gmra.mrb[12].mxu0 %vm210_vm4, %v734_v4  ;;  %v1054_v4 = vld [vmem:[%s1686_s6] ss:$0 sm:$0xff] }
0x1333   :  { %v772_v5 = vpop.f32.mrb[12].mxu0 }
0x1334   :  { %v774_v6 = vpop.f32.mrb[13].mxu0 }
0x1335   :  { %v779_v1 = vsel %vm174_vm1, %v772_v5, %v774_v6  ;;  %v776_v8 = vpop.f32.mrb[14].mxu0 }
0x1336   :  { %v781_v10 = vadd.f32 %v780_v7, %v779_v1  ;;  %v777_v11 = vpop.f32.mrb[15].mxu0 }
0x1338   :  { %1112 = vtanh.f32 %v781_v10 }
0x1342   :  { %v1113_v12 = vpop.eup %1112 }
0x1343   :  { %793 = vrot.lane.b32.xlu1 %v1113_v12, %s1248_s21  ;;  %v783_v15 = vadd.f32 1.0, %v1113_v12 }
0x1345   :  { %v784_v16 = vmul.f32 0.5, %v783_v15 }
0x1347   :  { %788 = vrot.lane.b32.xlu1 %v787_v13, %s1249_s22  ;;  %v785_v49 = vsel %vm1435_vm7, %v1113_v12, %v784_v16 }
0x13b5   :  { %v794_v17 = vpop.permute.xlu1 %793 }
0x13b6   :  { %v796_v18 = vmul.f32 %v794_v17, %v784_v16 }
0x13b8   :  { %798 = vrot.lane.b32.xlu0 %v796_v18, %s1249_s22 }
0x13b9   :  { %v789_v25 = vpop.permute.xlu1 %788 }
0x13ba   :  { %v791_v26 = vmul.f32 %v789_v25, %v784_v16 }
0x13bc   :  { %811 = vrot.lane.b32.xlu0 %v810_v22, %s1250_s23 }
0x142a   :  { %v799_v28 = vpop.permute.xlu0 %798 }
0x142b   :  { %v801_v29 = vadd.f32 %v799_v28, %v791_v26 }
0x142d   :  { %v1590_v30 = vsel %vm209_vm14, %v801_v29, %v789_v25 }
0x142e   :  { %1114 = vtanh.f32 %v1590_v30  ;;  %v812_v14 = vpop.permute.xlu0 %811  ;;  %v887_v52 = vrot.slane %v1590_v30, 4 }
0x1438   :  { %v1115_v31 = vpop.eup %1114 }
0x1439   :  { %805 = vrot.lane.b32.xlu1 %v1115_v31, %s1248_s21 }
0x14ab   :  { %v806_v32 = vpop.permute.xlu1 %805 }
0x14ac   :  { %v808_v34 = vmul.f32 %v806_v32, %v784_v16 }
0x14ae   :  { %v814_v35 = vsel %vm209_vm14, %v808_v34, %v812_v14 }
0x14af   :  { %v815_v36 = vpack.c.bf16 %v814_v35, %v814_v35  ;;  %v905_v62 = vrot.slane %v814_v35, 4 }
0x14b1   :  { %817 = vrot.lane.b32.xlu1 %v815_v36, %s1249_s22 }
0x1523   :  { %v818_v37 = vpop.permute.xlu1 %817 }
0x1524   :  { %1052 = vmatmul.mubr.msk.bf16.vlgmr.msra.gmra.mrb[16].mxu1 %vm210_vm4, %v818_v37 }
0x15f7   :  { %v856_v39 = vpop.f32.mrb[16].mxu1 }
0x15f8   :  { %v858_v20 = vpop.f32.mrb[17].mxu1 }
0x15f9   :  { %v863_v40 = vsel %vm174_vm1, %v856_v39, %v858_v20  ;;  %v860_v41 = vpop.f32.mrb[18].mxu1 }
0x15fa   :  { %v865_v27 = vadd.f32 %v864_v24, %v863_v40  ;;  %v861_v42 = vpop.f32.mrb[19].mxu1 }
0x15fc   :  { %1116 = vtanh.f32 %v865_v27 }
0x1606   :  { %v1117_v43 = vpop.eup %1116 }
0x1607   :  { %872 = vrot.lane.b32.xlu0 %v1117_v43, %s1248_s21  ;;  %v867_v44 = vadd.f32 1.0, %v1117_v43 }
0x1609   :  { %v868_v45 = vmul.f32 0.5, %v867_v44 }
0x160b   :  { %v869_v47 = vsel %vm1435_vm7, %v1117_v43, %v868_v45  ;;  %v870_v54 = vmul.f32 %v868_v45, %v1590_v30 }
0x160c   :  { %v920_v48 = vrot.slane %v869_v47, 4 }
0x160e   :  { %v926_v33 = vsel %vm922_vm8, %v785_v49, %v920_v48 }
0x160f   :  { %930 = vst [vmem:[#allocation10 + $0x18] sm:$0xff] %v926_v33 }
0x1679   :  { %v873_v50 = vpop.permute.xlu0 %872 }
0x167a   :  { %v875_v51 = vmul.f32 %v873_v50, %v868_v45 }
0x167c   :  { %877 = vrot.lane.b32.xlu1 %v875_v51, %s1249_s22 }
0x1680   :  { %888 = vrot.lane.b32.xlu1 %v887_v52, %s1250_s23 }
0x16ee   :  { %v878_v55 = vpop.permute.xlu1 %877 }
0x16ef   :  { %v880_v56 = vadd.f32 %v878_v55, %v870_v54 }
0x16f1   :  { %v882_v57 = vrot.slane %v880_v56, 4 }
0x16f2   :  { %v889_v21 = vpop.permute.xlu1 %888 }
0x16f3   :  { %883 = vrot.lane.b32.xlu0 %v882_v57, %s1250_s23 }
0x1765   :  { %v884_v58 = vpop.permute.xlu0 %883 }
0x1766   :  { %v891_v59 = vsel %vm209_vm14, %v884_v58, %v889_v21 }
0x1767   :  { %1118 = vtanh.f32 %v891_v59 }
0x1771   :  { %v1119_v60 = vpop.eup %1118 }
0x1772   :  { %v894_v61 = vrot.slane %v1119_v60, 4 }
0x1774   :  { %895 = vrot.lane.b32.xlu0 %v894_v61, %s1250_s23 }
0x1778   :  { %906 = vrot.lane.b32.xlu0 %v905_v62, %s1249_s22 }
0x177c   :  { %934 = vrot.lane.b32.xlu0 %v1509_v46, %s1249_s22  ;;  %v1053_v46 = vld [vmem:[%s1685_s5] ss:$0 sm:$0xff]  ;;  %s1251_s5 = smov [#allocation10]  }
0x177d   :  { %s1013_s6 = sshll.u32 %s1251_s5, 4  ;;  %s1014_s6 = int_to_ptr.vmem [resolvable:$true] %s1013_s6 }
0x177e   :  { %s1188_s12 = scalar_lea.vmem %s1014_s6, 512  ;;  %p1193_p11 = scmp.lt.s32.totalorder %s1014_s6, %s1014_s6 }
0x177f   :  { %p1189_p10 = scmp.ne.s32.totalorder %s1014_s6, %s1188_s12  ;;  %p1194_p12 = scmp.lt.s32.totalorder %s1188_s12, %s1188_s12 }
0x1780   :  { %941 = vrot.lane.b32.xlu0 %v891_v59, %s1249_s22 }
0x1781   :  { %p1195_p13 = por %p1194_p12, %p1193_p11 }
0x1783   :  { %p1196_p0 = pnand %p1195_p13, %p1189_p10 }
0x17e6   :  { %v896_v63 = vpop.permute.xlu0 %895 }
0x17e7   :  { %v898_v2 = vmul.f32 %v896_v63, %v868_v45 }
0x17e9   :  { %v900_v3 = vrot.slane %v898_v2, 4 }
0x17ea   :  { %v907_v5 = vpop.permute.xlu0 %906 }
0x17eb   :  { %901 = vrot.lane.b32.xlu1 %v900_v3, %s1249_s22 }
0x17ee   :  { %v935_v11 = vpop.permute.xlu0 %934 }
0x17ef   :  { %931 = vrot.lane.b32.xlu1 %v1451_v38, %s1249_s22  ;;  %v945_v15 = vsel %vm922_vm8, %v1481_v9, %v935_v11 }
0x17f2   :  { %v942_v18 = vpop.permute.xlu0 %941 }
0x17f3   :  { %937 = vrot.lane.b32.xlu1 %v1565_v53, %s1249_s22 }
0x185d   :  { %v902_v6 = vpop.permute.xlu1 %901 }
0x185e   :  { %v909_v1 = vsel %vm209_vm14, %v902_v6, %v907_v5 }
0x185f   :  { %v983_v7 = vmul.f32 %v1054_v4, %v909_v1  ;;  %v975_v8 = vmul.f32 %v1053_v46, %v909_v1 }
0x1861   :  { %v985_v10 = vrot.slane %v983_v7, 2  ;;  %v932_v38 = vpop.permute.xlu1 %931 }
0x1862   :  { %v944_v53 = vsel %vm922_vm8, %v1418_v0, %v932_v38  ;;  %v947_v0 = vsel %vm922_vm8, %v1590_v30, %v942_v18 }
0x1863   :  { %952 = vrot.lane.b32.xlu0 %v944_v53, %s1250_s23  ;;  %v987_v12 = vadd.f32 %v985_v10, %v975_v8 }
0x1865   :  { %v989_v13 = vsel %vm988_vm15, %v987_v12, 0.0  ;;  %v938_v16 = vpop.permute.xlu1 %937 }
0x1866   :  { %990 = vadd.xlane.f32.xlu1 %v989_v13  ;;  %v946_v17 = vsel %vm922_vm8, %v1538_v19, %v938_v16 }
0x1867   :  { %954 = vrot.lane.b32.xlu0 %v945_v15, %s1250_s23 }
0x186b   :  { %956 = vrot.lane.b32.xlu0 %v946_v17, %s1250_s23 }
0x186f   :  { %958 = vrot.lane.b32.xlu0 %v947_v0, %s1250_s23 }
0x1870   :  { %1199 = shalt.err (!%p1196_p0)
}
0x1871   :  { %s1200_s14 = scalar_lea.hbm %s1689_s9, 512 }
0x1872   :  { %p1201_p1 = scmp.ne.s32.totalorder %s1689_s9, %s1200_s14  ;;  %p1204_p2 = scmp.lt.u32.totalorder %s1200_s14, %s1689_s9 }
0x1874   :  { %p1206_p3 = pnand %p1204_p2, %p1201_p1 }
0x1876   :  { %1209 = shalt.err (!%p1206_p3)
}
0x1877   :  { %1019 = dma.vmem_to_hbm [thread:$0]  %s1014_s6, 512, %s1689_s9, [#allocation6], %s1242_s26, %s1242_s26, %s1243_s27  }
0x1878   :  { %s1252_s20 = smov [#allocation11]  }
0x1879   :  { %s1025_s21 = sshll.u32 %s1252_s20, 4  ;;  %s1026_s21 = int_to_ptr.vmem [resolvable:$true] %s1025_s21 }
0x187a   :  { %s1210_s22 = scalar_lea.vmem %s1026_s21, 512  ;;  %p1215_p5 = scmp.lt.s32.totalorder %s1026_s21, %s1026_s21 }
0x187b   :  { %p1211_p4 = scmp.ne.s32.totalorder %s1026_s21, %s1210_s22  ;;  %p1216_p6 = scmp.lt.s32.totalorder %s1210_s22, %s1210_s22 }
0x187d   :  { %p1217_p7 = por %p1216_p6, %p1215_p5 }
0x187f   :  { %p1218_p8 = pnand %p1217_p7, %p1211_p4 }
0x18d5   :  { %v953_v9 = vpop.permute.xlu0 %952 }
0x18d6   :  { %964 = vst.msk [vmem:[#allocation11] sm:$0xff] %vm210_vm4, %v953_v9 }
0x18d9   :  { %v955_v19 = vpop.permute.xlu0 %954 }
0x18da   :  { %965 = vst.msk [vmem:[#allocation11 + $0x8] sm:$0xff] %vm210_vm4, %v955_v19 }
0x18dd   :  { %v957_v22 = vpop.permute.xlu0 %956 }
0x18de   :  { %966 = vst.msk [vmem:[#allocation11 + $0x10] sm:$0xff] %vm210_vm4, %v957_v22 }
0x18e1   :  { %v959_v23 = vpop.permute.xlu0 %958 }
0x18e2   :  { %967 = vst.msk [vmem:[#allocation11 + $0x18] sm:$0xff] %vm210_vm4, %v959_v23 }
0x18e3   :  { %1221 = shalt.err (!%p1218_p8)
}
0x18e4   :  { %s1222_s7 = scalar_lea.hbm %s1690_s10, 512 }
0x18e5   :  { %p1223_p9 = scmp.ne.s32.totalorder %s1690_s10, %s1222_s7  ;;  %p1226_p10 = scmp.lt.u32.totalorder %s1222_s7, %s1690_s10 }
0x18e7   :  { %p1228_p11 = pnand %p1226_p10, %p1223_p9 }
0x18e9   :  { %1231 = shalt.err (!%p1228_p11)
}
0x18ea   :  { %1031 = dma.vmem_to_hbm [thread:$0]  %s1026_s21, 512, %s1690_s10, [#allocation12], %s1242_s26, %s1242_s26, %s1243_s27   ;;  %v1055_v25 = vld [vmem:[#allocation3] ss:$0 sm:$0xff]  ;;  %vm1004_vm0 = vcmask 5124  }
0x18f3   :  { %v991_v26 = vpop.xlane.xlu1 %990 }
0x18f4   :  { %v999_v28 = vadd.f32 %v1055_v25, %v991_v26 }
0x18f6   :  { %v1000_v29 = vmul.f32 0.5, %v999_v28 }
0x18f8   :  { %1120 = vtanh.f32 %v1000_v29 }
0x1902   :  { %v1121_v30 = vpop.eup %1120 }
0x1903   :  { %v1002_v31 = vadd.f32 1.0, %v1121_v30 }
0x1905   :  { %v1003_v32 = vmul.f32 0.5, %v1002_v31 }
0x1907   :  { %1005 = vst.msk [vmem:[%s1688_s8 - $0x4] sm:$0x30] %vm1004_vm0, %v1003_v32 }
0x1908   :  { %1236 = dma.done.wait [#allocation6], 512  }
0x1909   :  { %1237 = vsyncadd [#allocation6], 4294966784 }
0x190a   :  { %1238 = dma.done.wait [#allocation12], 512  }
0x190b   :  { %1239 = vsyncadd [#allocation12], 4294966784 }
0x190c   :  { %1040 = vsyncpa [#allocation5], 1 }
0x190d   :  { %1041 = vsyncpa [#allocation8], 1 }
0x190e   :  { %1042 = vsyncpa [#allocation6], 1 }
0x190f   :  { %1043 = vsyncpa [#allocation12], 1 }

</bundles_post_ra>
